<compile_context>
chip_gen: v7x
topology: tpu7x:2x2x1
jax: 0.10.0
libtpu: 0.0.40
codegen_flags: <defaults>
</compile_context>

<pallas_src>
import functools

import jax
import jax.numpy as jnp
from jax.experimental import pallas as pl
from jax.experimental.pallas import tpu as pltpu

INPUT_DIM = 784          # native lane width for x / x_hat (full-dim blocks)
HIDDEN_DIM = 400
LATENT_DIM = 20

HID_PAD = 512            # 400 -> 4 * 128
LAT_PAD = 128            # latent group width (mu group / logvar group)
HEAD_PAD = 2 * LAT_PAD   # fused head: [mu | 0...] [logvar | 0...]


def _round_up(x, m):
    return (x + m - 1) // m * m


def _choose_tb(batch):
    """Batch tile: multiple of 16 (bf16 sublane packing); >=2 (ideally >=4)
    grid steps for large batches so both v7x TensorCores are used; <=512."""
    b16 = _round_up(max(batch, 1), 16)
    if b16 <= 128:
        return b16                       # single small step
    tb = _round_up((b16 + 7) // 8, 128)  # aim for ~8 steps
    return max(128, min(tb, 512))


def _sigmoid_in_bf16():
    """bf16 EUP exists on v6e/v7x; keep f32 on v5e/unknown."""
    try:
        kind = jax.devices()[0].device_kind.lower()
    except Exception:
        return False
    return ("v6" in kind) or ("v7" in kind)


def vae_kernel(
    x_ref,                # (TB, 784)      bf16
    eps_ref,              # (TB, 128)      f32  (eps in lanes [0,20), rest 0)
    w_e1_ref, b_e1_ref,   # (784, 512) bf16, (1, 512) f32
    w_h_ref, b_h_ref,     # (512, 256) bf16, (1, 256) f32
    w_d1_ref, b_d1_ref,   # (128, 512) bf16, (1, 512) f32
    w_d2_ref, b_d2_ref,   # (512, 784) bf16, (1, 784) f32
    xhat_ref,             # (TB, 784)      bf16
    head_ref,             # (TB, 256)      bf16   [mu|pad | logvar|pad]
    *,
    sigmoid_in_bf16,
):
    # ---- Encoder fc1 + ReLU (x already bf16; f32 accumulate) ----
    h = jnp.dot(x_ref[...], w_e1_ref[...],
                preferred_element_type=jnp.float32) + b_e1_ref[...]
    h = jnp.maximum(h, 0.0)

    # ---- Fused mu|logvar head (lane-aligned 128-wide groups) ----
    head = jnp.dot(h.astype(jnp.bfloat16), w_h_ref[...],
                   preferred_element_type=jnp.float32) + b_h_ref[...]
    mu = head[:, :LAT_PAD]        # vreg-aligned slice
    logvar = head[:, LAT_PAD:]    # vreg-aligned slice

    # ---- Reparameterization: z = mu + eps * exp(0.5 * logvar) ----
    # Padded lanes: mu=0, logvar=0 -> exp=1, eps=0 -> z=0 (and w_d1 rows are 0).
    z = mu + eps_ref[...] * jnp.exp(0.5 * logvar)

    # ---- Decoder (K=128 MXU-aligned contraction) ----
    hd = jnp.dot(z.astype(jnp.bfloat16), w_d1_ref[...],
                 preferred_element_type=jnp.float32) + b_d1_ref[...]
    hd = jnp.maximum(hd, 0.0)
    logits = jnp.dot(hd.astype(jnp.bfloat16), w_d2_ref[...],
                     preferred_element_type=jnp.float32) + b_d2_ref[...]

    if sigmoid_in_bf16:
        xhat_ref[...] = jax.nn.sigmoid(logits.astype(jnp.bfloat16))
    else:
        xhat_ref[...] = jax.nn.sigmoid(logits).astype(xhat_ref.dtype)
    head_ref[...] = head.astype(head_ref.dtype)


def _cost_estimate(b_pad):
    mm = (INPUT_DIM * HID_PAD + HID_PAD * HEAD_PAD
          + LAT_PAD * HID_PAD + HID_PAD * INPUT_DIM)
    flops = 2 * b_pad * mm
    transcendentals = b_pad * (LAT_PAD + INPUT_DIM)          # exp + sigmoid
    weight_bytes = 2 * mm + 4 * (HID_PAD + HEAD_PAD + HID_PAD + INPUT_DIM)
    act_bytes = b_pad * (2 * INPUT_DIM        # x  bf16
                         + 4 * LAT_PAD        # eps f32
                         + 2 * INPUT_DIM      # x_hat bf16
                         + 2 * HEAD_PAD)      # head bf16
    return pl.CostEstimate(flops=flops, transcendentals=transcendentals,
                           bytes_accessed=weight_bytes + act_bytes)


def vae_forward(x, eps, params):
    """x: (B, 784) f32, eps: (B, 20) f32, params: output of pack_params.

    Returns (x_hat bf16 (B,784), mu f32 (B,20), logvar f32 (B,20))."""
    B = x.shape[0]
    TB = _choose_tb(B)
    B_pad = _round_up(B, TB)
    grid = (B_pad // TB,)

    # x goes in at its native 784-lane width in bf16 (single convert, no
    # feature-dim pad pass).  Batch pad only when B % TB != 0.
    x_in = x.astype(jnp.bfloat16)
    if B_pad != B:
        x_in = jnp.zeros((B_pad, INPUT_DIM), jnp.bfloat16).at[:B].set(x_in)
    # eps is tiny: pad its 20 lanes into a 128-lane group (zeros elsewhere).
    eps_in = jnp.zeros((B_pad, LAT_PAD), jnp.float32).at[:B, :LATENT_DIM].set(eps)

    resident = lambda shape: pl.BlockSpec(shape, lambda i: (0, 0))
    in_specs = [
        pl.BlockSpec((TB, INPUT_DIM), lambda i: (i, 0)),   # x
        pl.BlockSpec((TB, LAT_PAD), lambda i: (i, 0)),     # eps
        resident((INPUT_DIM, HID_PAD)), resident((1, HID_PAD)),   # enc fc1
        resident((HID_PAD, HEAD_PAD)), resident((1, HEAD_PAD)),   # mu|logvar
        resident((LAT_PAD, HID_PAD)), resident((1, HID_PAD)),     # dec fc1
        resident((HID_PAD, INPUT_DIM)), resident((1, INPUT_DIM)), # dec fc2
    ]
    out_specs = (
        pl.BlockSpec((TB, INPUT_DIM), lambda i: (i, 0)),   # x_hat
        pl.BlockSpec((TB, HEAD_PAD), lambda i: (i, 0)),    # mu | logvar
    )

    kernel = functools.partial(vae_kernel, sigmoid_in_bf16=_sigmoid_in_bf16())

    xhat_pad, head = pl.pallas_call(
        kernel,
        grid=grid,
        out_shape=(
            jax.ShapeDtypeStruct((B_pad, INPUT_DIM), jnp.bfloat16),
            jax.ShapeDtypeStruct((B_pad, HEAD_PAD), jnp.bfloat16),
        ),
        in_specs=in_specs,
        out_specs=out_specs,
        compiler_params=pltpu.CompilerParams(
            dimension_semantics=("parallel",),
            # TB=512: weights ~2 MB (bf16) + double-buffered bf16 x/x_hat/head
            # + f32 intermediates is well under 16 MB; 32 MiB is safe on
            # v5e/v6e (128 MiB) and v7x (64 MiB physical).
            vmem_limit_bytes=32 * 1024 * 1024,
        ),
        cost_estimate=_cost_estimate(B_pad),
    )(x_in, eps_in, *params)

    x_hat = xhat_pad if B_pad == B else xhat_pad[:B]
    mu = head[:B, :LATENT_DIM].astype(jnp.float32)
    logvar = head[:B, LAT_PAD:LAT_PAD + LATENT_DIM].astype(jnp.float32)
    return x_hat, mu, logvar


def init_params(key):
    """Deterministic init mimicking nn.Linear default (U[-1/sqrt(fan_in), +]).

    Weights are stored as (in_features, out_features): y = x @ W + b.
    """
    def linear(key, fan_in, fan_out):
        kw, kb = jax.random.split(key)
        bound = 1.0 / jnp.sqrt(fan_in)
        w = jax.random.uniform(kw, (fan_in, fan_out), jnp.float32, -bound, bound)
        b = jax.random.uniform(kb, (1, fan_out), jnp.float32, -bound, bound)
        return w, b

    k1, k2, k3, k4, k5 = jax.random.split(key, 5)
    w_e1, b_e1 = linear(k1, INPUT_DIM, HIDDEN_DIM)    # encoder.fc1
    w_mu, b_mu = linear(k2, HIDDEN_DIM, LATENT_DIM)   # encoder.fc_mu
    w_lv, b_lv = linear(k3, HIDDEN_DIM, LATENT_DIM)   # encoder.fc_logvar
    w_d1, b_d1 = linear(k4, LATENT_DIM, HIDDEN_DIM)   # decoder.fc1
    w_d2, b_d2 = linear(k5, HIDDEN_DIM, INPUT_DIM)    # decoder.fc2
    return (w_e1, b_e1, w_mu, b_mu, w_lv, b_lv, w_d1, b_d1, w_d2, b_d2)


def pack_params(params):
    """Fuse mu|logvar head into lane-aligned 128-wide groups, zero-pad hidden
    dims to 512, cast weights to bf16. Keep x / x_hat feature dim at 784."""
    (w_e1, b_e1, w_mu, b_mu, w_lv, b_lv, w_d1, b_d1, w_d2, b_d2) = params

    def pad2(a, rows, cols):
        return jnp.zeros((rows, cols), a.dtype).at[:a.shape[0], :a.shape[1]].set(a)

    # Encoder fc1: K stays 784 (matches raw x), N padded 400 -> 512.
    w_e1_p = pad2(w_e1, INPUT_DIM, HID_PAD).astype(jnp.bfloat16)
    b_e1_p = pad2(b_e1, 1, HID_PAD)

    # Fused head: mu -> lanes [0,128), logvar -> lanes [128,256), zeros else.
    w_h = jnp.zeros((HID_PAD, HEAD_PAD), jnp.float32)
    w_h = w_h.at[:HIDDEN_DIM, :LATENT_DIM].set(w_mu)
    w_h = w_h.at[:HIDDEN_DIM, LAT_PAD:LAT_PAD + LATENT_DIM].set(w_lv)
    b_h = jnp.zeros((1, HEAD_PAD), jnp.float32)
    b_h = b_h.at[:, :LATENT_DIM].set(b_mu)
    b_h = b_h.at[:, LAT_PAD:LAT_PAD + LATENT_DIM].set(b_lv)

    # Decoder fc1: K padded 20 -> 128 (zero rows), N padded 400 -> 512.
    w_d1_p = pad2(w_d1, LAT_PAD, HID_PAD).astype(jnp.bfloat16)
    b_d1_p = pad2(b_d1, 1, HID_PAD)

    # Decoder fc2: K padded 400 -> 512 (zero rows), N stays 784.
    w_d2_p = pad2(w_d2, HID_PAD, INPUT_DIM).astype(jnp.bfloat16)

    return (w_e1_p, b_e1_p, w_h.astype(jnp.bfloat16), b_h,
            w_d1_p, b_d1_p, w_d2_p, b_d2)


def vae_reference(x, eps, packed):
    """Pure-JAX reference mirroring the kernel math (same dtypes / padding)."""
    (w_e1, b_e1, w_h, b_h, w_d1, b_d1, w_d2, b_d2) = packed
    B = x.shape[0]
    xb = x.astype(jnp.bfloat16)
    h = jnp.maximum(jnp.dot(xb, w_e1, preferred_element_type=jnp.float32) + b_e1,
                    0.0)
    head = jnp.dot(h.astype(jnp.bfloat16), w_h,
                   preferred_element_type=jnp.float32) + b_h
    mu = head[:, :LATENT_DIM]
    logvar = head[:, LAT_PAD:LAT_PAD + LATENT_DIM]
    z_pad = jnp.zeros((B, LAT_PAD), jnp.float32)
    z_pad = z_pad.at[:, :LATENT_DIM].set(mu + eps * jnp.exp(0.5 * logvar))
    hd = jnp.maximum(jnp.dot(z_pad.astype(jnp.bfloat16), w_d1,
                             preferred_element_type=jnp.float32) + b_d1, 0.0)
    logits = jnp.dot(hd.astype(jnp.bfloat16), w_d2,
                     preferred_element_type=jnp.float32) + b_d2
    if _sigmoid_in_bf16():
        x_hat = jax.nn.sigmoid(logits.astype(jnp.bfloat16))
    else:
        x_hat = jax.nn.sigmoid(logits).astype(jnp.bfloat16)
    # Mirror the kernel's bf16 head store for the returned mu/logvar.
    mu_r = mu.astype(jnp.bfloat16).astype(jnp.float32)
    lv_r = logvar.astype(jnp.bfloat16).astype(jnp.float32)
    return x_hat, mu_r, lv_r


if __name__ == "__main__":
    key = jax.random.PRNGKey(0)
    k_params, k_x, k_eps = jax.random.split(key, 3)

    B = 8
    params = pack_params(init_params(k_params))
    # MNIST-like input: values in [0, 1], flattened 28*28 = 784.
    x = jax.random.uniform(k_x, (B, INPUT_DIM), jnp.float32, 0.0, 1.0)
    # eps ~ N(0, 1), same shape as std (== mu/logvar shape).
    eps = jax.random.normal(k_eps, (B, LATENT_DIM), jnp.float32)

    x_hat, mu, logvar = jax.jit(vae_forward)(x, eps, params)
    jax.block_until_ready((x_hat, mu, logvar))

    assert x_hat.shape == (B, INPUT_DIM) and x_hat.dtype == jnp.bfloat16
    assert mu.shape == (B, LATENT_DIM) and logvar.shape == (B, LATENT_DIM)
    xh32 = x_hat.astype(jnp.float32)
    assert bool(jnp.all((xh32 >= 0.0) & (xh32 <= 1.0)))

    # Numerical check against a pure-JAX reference with identical precision.
    x_hat_r, mu_r, logvar_r = vae_reference(x, eps, params)
    assert bool(jnp.allclose(xh32, x_hat_r.astype(jnp.float32),
                             atol=1.5e-2, rtol=1.5e-2))
    assert bool(jnp.allclose(mu, mu_r, atol=1e-2, rtol=1e-2))
    assert bool(jnp.allclose(logvar, logvar_r, atol=1e-2, rtol=1e-2))

    print("KERNEL_OK")
</pallas_src>

<mosaic_0001>
module attributes {stable_mosaic.version = 11 : i64} {
  func.func @vae_kernel(%arg0: i32, %arg1: memref<16x784xbf16, #tpu.memory_space<vmem>>, %arg2: memref<16x128xf32, #tpu.memory_space<vmem>>, %arg3: memref<784x512xbf16, #tpu.memory_space<vmem>>, %arg4: memref<1x512xf32, #tpu.memory_space<vmem>>, %arg5: memref<512x256xbf16, #tpu.memory_space<vmem>>, %arg6: memref<1x256xf32, #tpu.memory_space<vmem>>, %arg7: memref<128x512xbf16, #tpu.memory_space<vmem>>, %arg8: memref<1x512xf32, #tpu.memory_space<vmem>>, %arg9: memref<512x784xbf16, #tpu.memory_space<vmem>>, %arg10: memref<1x784xf32, #tpu.memory_space<vmem>>, %arg11: memref<16x784xbf16, #tpu.memory_space<vmem>>, %arg12: memref<16x256xbf16, #tpu.memory_space<vmem>>) attributes {dimension_semantics = [#tpu.dimension_semantics<parallel>], iteration_bounds = array<i64: 1>, scalar_prefetch = 0 : i64, scratch_operands = 0 : i64, tpu.core_type = #tpu.core_type<tc>, window_params = [{transform_indices = @transform_0, window_bounds = array<i64: 16, 784>}, {transform_indices = @transform_1, window_bounds = array<i64: 16, 128>}, {pipeline_mode = #tpu.pipeline_mode<synchronous>, transform_indices = @transform_2, window_bounds = array<i64: 784, 512>}, {pipeline_mode = #tpu.pipeline_mode<synchronous>, transform_indices = @transform_3, window_bounds = array<i64: 1, 512>}, {pipeline_mode = #tpu.pipeline_mode<synchronous>, transform_indices = @transform_4, window_bounds = array<i64: 512, 256>}, {pipeline_mode = #tpu.pipeline_mode<synchronous>, transform_indices = @transform_5, window_bounds = array<i64: 1, 256>}, {pipeline_mode = #tpu.pipeline_mode<synchronous>, transform_indices = @transform_6, window_bounds = array<i64: 128, 512>}, {pipeline_mode = #tpu.pipeline_mode<synchronous>, transform_indices = @transform_7, window_bounds = array<i64: 1, 512>}, {pipeline_mode = #tpu.pipeline_mode<synchronous>, transform_indices = @transform_8, window_bounds = array<i64: 512, 784>}, {pipeline_mode = #tpu.pipeline_mode<synchronous>, transform_indices = @transform_9, window_bounds = array<i64: 1, 784>}, {transform_indices = @transform_10, window_bounds = array<i64: 16, 784>}, {transform_indices = @transform_11, window_bounds = array<i64: 16, 256>}]} {
    %c0 = arith.constant 0 : index
    %c0_0 = arith.constant 0 : index
    %0 = vector.load %arg1[%c0, %c0_0] : memref<16x784xbf16, #tpu.memory_space<vmem>>, vector<16x784xbf16>
    %c0_1 = arith.constant 0 : index
    %c0_2 = arith.constant 0 : index
    %1 = vector.load %arg3[%c0_1, %c0_2] : memref<784x512xbf16, #tpu.memory_space<vmem>>, vector<784x512xbf16>
    %cst = arith.constant dense<0.000000e+00> : vector<16x512xf32>
    %2 = tpu.matmul %0, %1, %cst {dimension_numbers = #tpu.dot_dimension_numbers<[1], [0], [0], [1], [0, 0, 1, 1], [], []>} : vector<16x784xbf16>, vector<784x512xbf16>, vector<16x512xf32> -> vector<16x512xf32>
    %c0_3 = arith.constant 0 : index
    %c0_4 = arith.constant 0 : index
    %3 = vector.load %arg4[%c0_3, %c0_4] : memref<1x512xf32, #tpu.memory_space<vmem>>, vector<1x512xf32>
    %4 = vector.broadcast %3 : vector<1x512xf32> to vector<16x512xf32>
    %5 = arith.addf %2, %4 : vector<16x512xf32>
    %cst_5 = arith.constant 0.000000e+00 : f32
    %6 = vector.broadcast %cst_5 : f32 to vector<16x512xf32>
    %7 = arith.maximumf %5, %6 : vector<16x512xf32>
    %8 = arith.truncf %7 : vector<16x512xf32> to vector<16x512xbf16>
    %c0_6 = arith.constant 0 : index
    %c0_7 = arith.constant 0 : index
    %9 = vector.load %arg5[%c0_6, %c0_7] : memref<512x256xbf16, #tpu.memory_space<vmem>>, vector<512x256xbf16>
    %cst_8 = arith.constant dense<0.000000e+00> : vector<16x256xf32>
    %10 = tpu.matmul %8, %9, %cst_8 {dimension_numbers = #tpu.dot_dimension_numbers<[1], [0], [0], [1], [0, 0, 1, 1], [], []>} : vector<16x512xbf16>, vector<512x256xbf16>, vector<16x256xf32> -> vector<16x256xf32>
    %c0_9 = arith.constant 0 : index
    %c0_10 = arith.constant 0 : index
    %11 = vector.load %arg6[%c0_9, %c0_10] : memref<1x256xf32, #tpu.memory_space<vmem>>, vector<1x256xf32>
    %12 = vector.broadcast %11 : vector<1x256xf32> to vector<16x256xf32>
    %13 = arith.addf %10, %12 : vector<16x256xf32>
    %14 = vector.extract_strided_slice %13 {offsets = [0, 0], sizes = [16, 128], strides = [1, 1]} : vector<16x256xf32> to vector<16x128xf32>
    %15 = vector.extract_strided_slice %13 {offsets = [0, 128], sizes = [16, 128], strides = [1, 1]} : vector<16x256xf32> to vector<16x128xf32>
    %c0_11 = arith.constant 0 : index
    %c0_12 = arith.constant 0 : index
    %16 = vector.load %arg2[%c0_11, %c0_12] : memref<16x128xf32, #tpu.memory_space<vmem>>, vector<16x128xf32>
    %cst_13 = arith.constant 5.000000e-01 : f32
    %17 = vector.broadcast %cst_13 : f32 to vector<16x128xf32>
    %18 = arith.mulf %17, %15 : vector<16x128xf32>
    %19 = math.exp %18 : vector<16x128xf32>
    %20 = arith.mulf %16, %19 : vector<16x128xf32>
    %21 = arith.addf %14, %20 : vector<16x128xf32>
    %22 = arith.truncf %21 : vector<16x128xf32> to vector<16x128xbf16>
    %c0_14 = arith.constant 0 : index
    %c0_15 = arith.constant 0 : index
    %23 = vector.load %arg7[%c0_14, %c0_15] : memref<128x512xbf16, #tpu.memory_space<vmem>>, vector<128x512xbf16>
    %cst_16 = arith.constant dense<0.000000e+00> : vector<16x512xf32>
    %24 = tpu.matmul %22, %23, %cst_16 {dimension_numbers = #tpu.dot_dimension_numbers<[1], [0], [0], [1], [0, 0, 1, 1], [], []>} : vector<16x128xbf16>, vector<128x512xbf16>, vector<16x512xf32> -> vector<16x512xf32>
    %c0_17 = arith.constant 0 : index
    %c0_18 = arith.constant 0 : index
    %25 = vector.load %arg8[%c0_17, %c0_18] : memref<1x512xf32, #tpu.memory_space<vmem>>, vector<1x512xf32>
    %26 = vector.broadcast %25 : vector<1x512xf32> to vector<16x512xf32>
    %27 = arith.addf %24, %26 : vector<16x512xf32>
    %cst_19 = arith.constant 0.000000e+00 : f32
    %28 = vector.broadcast %cst_19 : f32 to vector<16x512xf32>
    %29 = arith.maximumf %27, %28 : vector<16x512xf32>
    %30 = arith.truncf %29 : vector<16x512xf32> to vector<16x512xbf16>
    %c0_20 = arith.constant 0 : index
    %c0_21 = arith.constant 0 : index
    %31 = vector.load %arg9[%c0_20, %c0_21] : memref<512x784xbf16, #tpu.memory_space<vmem>>, vector<512x784xbf16>
    %cst_22 = arith.constant dense<0.000000e+00> : vector<16x784xf32>
    %32 = tpu.matmul %30, %31, %cst_22 {dimension_numbers = #tpu.dot_dimension_numbers<[1], [0], [0], [1], [0, 0, 1, 1], [], []>} : vector<16x512xbf16>, vector<512x784xbf16>, vector<16x784xf32> -> vector<16x784xf32>
    %c0_23 = arith.constant 0 : index
    %c0_24 = arith.constant 0 : index
    %33 = vector.load %arg10[%c0_23, %c0_24] : memref<1x784xf32, #tpu.memory_space<vmem>>, vector<1x784xf32>
    %34 = vector.broadcast %33 : vector<1x784xf32> to vector<16x784xf32>
    %35 = arith.addf %32, %34 : vector<16x784xf32>
    %36 = arith.negf %35 : vector<16x784xf32>
    %37 = math.exp %36 : vector<16x784xf32>
    %cst_25 = arith.constant 1.000000e+00 : f32
    %38 = vector.broadcast %cst_25 : f32 to vector<16x784xf32>
    %39 = arith.addf %38, %37 : vector<16x784xf32>
    %40 = arith.divf %38, %39 : vector<16x784xf32>
    %41 = arith.truncf %40 : vector<16x784xf32> to vector<16x784xbf16>
    %c0_26 = arith.constant 0 : index
    %c0_27 = arith.constant 0 : index
    %42 = vector.load %arg11[%c0_26, %c0_27] : memref<16x784xbf16, #tpu.memory_space<vmem>>, vector<16x784xbf16>
    tpu.vector_store %arg11[%c0_26, %c0_27], %41 {strides = array<i32>} : memref<16x784xbf16, #tpu.memory_space<vmem>>, vector<16x784xbf16>,
    %43 = arith.truncf %13 : vector<16x256xf32> to vector<16x256xbf16>
    %c0_28 = arith.constant 0 : index
    %c0_29 = arith.constant 0 : index
    %44 = vector.load %arg12[%c0_28, %c0_29] : memref<16x256xbf16, #tpu.memory_space<vmem>>, vector<16x256xbf16>
    tpu.vector_store %arg12[%c0_28, %c0_29], %43 {strides = array<i32>} : memref<16x256xbf16, #tpu.memory_space<vmem>>, vector<16x256xbf16>,
    return
  }
  func.func @transform_0(%arg0: i32) -> (i32, i32) {
    %c0_i32 = arith.constant 0 : i32
    %c0_i32_0 = arith.constant 0 : i32
    return %arg0, %c0_i32 : i32, i32
  }
  func.func @transform_1(%arg0: i32) -> (i32, i32) {
    %c0_i32 = arith.constant 0 : i32
    %c0_i32_0 = arith.constant 0 : i32
    return %arg0, %c0_i32 : i32, i32
  }
  func.func @transform_2(%arg0: i32) -> (i32, i32) {
    %c0_i32 = arith.constant 0 : i32
    %c0_i32_0 = arith.constant 0 : i32
    %c0_i32_1 = arith.constant 0 : i32
    return %c0_i32, %c0_i32_0 : i32, i32
  }
  func.func @transform_3(%arg0: i32) -> (i32, i32) {
    %c0_i32 = arith.constant 0 : i32
    %c0_i32_0 = arith.constant 0 : i32
    %c0_i32_1 = arith.constant 0 : i32
    return %c0_i32, %c0_i32_0 : i32, i32
  }
  func.func @transform_4(%arg0: i32) -> (i32, i32) {
    %c0_i32 = arith.constant 0 : i32
    %c0_i32_0 = arith.constant 0 : i32
    %c0_i32_1 = arith.constant 0 : i32
    return %c0_i32, %c0_i32_0 : i32, i32
  }
  func.func @transform_5(%arg0: i32) -> (i32, i32) {
    %c0_i32 = arith.constant 0 : i32
    %c0_i32_0 = arith.constant 0 : i32
    %c0_i32_1 = arith.constant 0 : i32
    return %c0_i32, %c0_i32_0 : i32, i32
  }
  func.func @transform_6(%arg0: i32) -> (i32, i32) {
    %c0_i32 = arith.constant 0 : i32
    %c0_i32_0 = arith.constant 0 : i32
    %c0_i32_1 = arith.constant 0 : i32
    return %c0_i32, %c0_i32_0 : i32, i32
  }
  func.func @transform_7(%arg0: i32) -> (i32, i32) {
    %c0_i32 = arith.constant 0 : i32
    %c0_i32_0 = arith.constant 0 : i32
    %c0_i32_1 = arith.constant 0 : i32
    return %c0_i32, %c0_i32_0 : i32, i32
  }
  func.func @transform_8(%arg0: i32) -> (i32, i32) {
    %c0_i32 = arith.constant 0 : i32
    %c0_i32_0 = arith.constant 0 : i32
    %c0_i32_1 = arith.constant 0 : i32
    return %c0_i32, %c0_i32_0 : i32, i32
  }
  func.func @transform_9(%arg0: i32) -> (i32, i32) {
    %c0_i32 = arith.constant 0 : i32
    %c0_i32_0 = arith.constant 0 : i32
    %c0_i32_1 = arith.constant 0 : i32
    return %c0_i32, %c0_i32_0 : i32, i32
  }
  func.func @transform_10(%arg0: i32) -> (i32, i32) {
    %c0_i32 = arith.constant 0 : i32
    %c0_i32_0 = arith.constant 0 : i32
    return %arg0, %c0_i32 : i32, i32
  }
  func.func @transform_11(%arg0: i32) -> (i32, i32) {
    %c0_i32 = arith.constant 0 : i32
    %c0_i32_0 = arith.constant 0 : i32
    return %arg0, %c0_i32 : i32, i32
  }
}

</mosaic_0001>

<bundles_post_ra>
// kernel: vae_forward.1
= control target key start
LH: loop header
LB: loop body
LE: loop exit
PB: predicated region body
PF: predicated region fallthrough
CT: control target
= control target key end

     0   :  { %vm1279_vm0 = vcmask 130048   ;;  %vm4362_vm1 = vcmask 125952   ;;  %s7641_s2 = inlined_call_operand.vmem [shape: bf16[784,512], index: 2, kind: input, shape index: {}]   ;;  %s7642_s0 = inlined_call_operand.vmem [shape: bf16[16,784], index: 0, kind: input, shape index: {}]   ;;  %s7643_s4 = inlined_call_operand.vmem [shape: bf16[512,256], index: 4, kind: input, shape index: {}]   ;;  %s7644_s6 = inlined_call_operand.vmem [shape: bf16[128,512], index: 6, kind: input, shape index: {}]   ;;  %s7645_s3 = inlined_call_operand.vmem [shape: f32[1,512], index: 3, kind: input, shape index: {}]   ;;  %s7646_s8 = inlined_call_operand.vmem [shape: bf16[512,784], index: 8, kind: input, shape index: {}]   ;;  %s7647_s5 = inlined_call_operand.vmem [shape: f32[1,256], index: 5, kind: input, shape index: {}]   ;;  %s7648_s11 = inlined_call_operand.vmem [shape: bf16[16,256], index: 11, kind: output, shape index: {1}]   ;;  %s7649_s1 = inlined_call_operand.vmem [shape: f32[16,128], index: 1, kind: input, shape index: {}]   ;;  %s7650_s7 = inlined_call_operand.vmem [shape: f32[1,512], index: 7, kind: input, shape index: {}]   ;;  %s7651_s9 = inlined_call_operand.vmem [shape: f32[1,784], index: 9, kind: input, shape index: {}]   ;;  %s7652_s10 = inlined_call_operand.vmem [shape: bf16[16,784], index: 10, kind: output, shape index: {0}]  }
   0x1   :  { %v5058_v0 = vld [vmem:[%s7641_s2 + $0x4] ss:$16 sps:$4 sm:$0xff]   ;;  %v5060_v1 = vld [vmem:[%s7641_s2 + $0xc] ss:$16 sps:$4 sm:$0xff]   ;;  %v5062_v2 = vld [vmem:[%s7641_s2] ss:$16 sps:$4 sm:$0xff]  }
   0x2   :  { %1283 = vmatprep.subr.bf16.mxu0 %v5058_v0  ;;  %v5063_v3 = vld [vmem:[%s7641_s2 + $0x8] ss:$16 sps:$4 sm:$0xff]   ;;  %1455 = vmatprep.subr.bf16.mxu1 %v5060_v1  ;;  %v5064_v4 = vld [vmem:[%s7641_s2 + $0x24] ss:$16 sps:$4 sm:$0xff]   ;;  %v5066_v5 = vld [vmem:[%s7641_s2 + $0x2c] ss:$16 sps:$4 sm:$0xff]  }
   0x3   :  { %1284 = vmatpush1.bf16.msra.mxu0 %v5062_v2  ;;  %1456 = vmatpush1.bf16.msra.mxu1 %v5063_v3  ;;  %v5068_v6 = vld [vmem:[%s7641_s2 + $0x20] ss:$16 sps:$4 sm:$0xff]   ;;  %v5069_v7 = vld [vmem:[%s7641_s2 + $0x28] ss:$16 sps:$4 sm:$0xff]   ;;  %v5070_v8 = vld [vmem:[%s7641_s2 + $0x44] ss:$16 sps:$4 sm:$0xff]  }
   0x4   :  { %1285 = vmatprep.subr.bf16.mxu0 %v5064_v4  ;;  %1457 = vmatprep.subr.bf16.mxu1 %v5066_v5  ;;  %v5072_v9 = vld [vmem:[%s7641_s2 + $0x4c] ss:$16 sps:$4 sm:$0xff]   ;;  %v5074_v10 = vld [vmem:[%s7641_s2 + $0x40] ss:$16 sps:$4 sm:$0xff]   ;;  %v5075_v11 = vld [vmem:[%s7641_s2 + $0x48] ss:$16 sps:$4 sm:$0xff]  }
   0x5   :  { %v5076_v12 = vld [vmem:[%s7641_s2 + $0x64] ss:$16 sps:$4 sm:$0xff]   ;;  %v5078_v13 = vld [vmem:[%s7641_s2 + $0x6c] ss:$16 sps:$4 sm:$0xff]   ;;  %v5080_v14 = vld [vmem:[%s7641_s2 + $0x60] ss:$16 sps:$4 sm:$0xff]  }
   0x6   :  { %v5081_v15 = vld [vmem:[%s7641_s2 + $0x68] ss:$16 sps:$4 sm:$0xff]   ;;  %v5082_v16 = vld [vmem:[%s7641_s2 + $0x84] ss:$16 sps:$4 sm:$0xff]   ;;  %v5084_v17 = vld [vmem:[%s7641_s2 + $0x8c] ss:$16 sps:$4 sm:$0xff]  }
   0x7   :  { %1286 = vmatpush1.bf16.msra.mxu0 %v5068_v6  ;;  %1458 = vmatpush1.bf16.msra.mxu1 %v5069_v7  ;;  %v5086_v18 = vld [vmem:[%s7641_s2 + $0x80] ss:$16 sps:$4 sm:$0xff]   ;;  %v5087_v19 = vld [vmem:[%s7641_s2 + $0x88] ss:$16 sps:$4 sm:$0xff]   ;;  %v5088_v20 = vld [vmem:[%s7641_s2 + $0xa4] ss:$16 sps:$4 sm:$0xff]  }
   0x8   :  { %1287 = vmatprep.subr.bf16.mxu0 %v5070_v8  ;;  %1459 = vmatprep.subr.bf16.mxu1 %v5072_v9  ;;  %v5090_v21 = vld [vmem:[%s7641_s2 + $0xac] ss:$16 sps:$4 sm:$0xff]   ;;  %v5092_v22 = vld [vmem:[%s7641_s2 + $0xa0] ss:$16 sps:$4 sm:$0xff]   ;;  %v5093_v23 = vld [vmem:[%s7641_s2 + $0xa8] ss:$16 sps:$4 sm:$0xff]  }
   0x9   :  { %v5094_v24 = vld [vmem:[%s7641_s2 + $0xc4] ss:$16 sps:$4 sm:$0xff]   ;;  %v5096_v25 = vld [vmem:[%s7641_s2 + $0xcc] ss:$16 sps:$4 sm:$0xff]   ;;  %v5098_v26 = vld [vmem:[%s7641_s2 + $0xc0] ss:$16 sps:$4 sm:$0xff]  }
   0xa   :  { %v5099_v27 = vld [vmem:[%s7641_s2 + $0xc8] ss:$16 sps:$4 sm:$0xff]   ;;  %v5100_v28 = vld [vmem:[%s7641_s2 + $0xe4] ss:$16 sps:$4 sm:$0xff]   ;;  %v5102_v29 = vld [vmem:[%s7641_s2 + $0xec] ss:$16 sps:$4 sm:$0xff]  }
   0xb   :  { %1288 = vmatpush1.bf16.msra.mxu0 %v5074_v10  ;;  %1460 = vmatpush1.bf16.msra.mxu1 %v5075_v11  ;;  %v5104_v30 = vld [vmem:[%s7641_s2 + $0xe0] ss:$16 sps:$4 sm:$0xff]   ;;  %v5105_v31 = vld [vmem:[%s7641_s2 + $0xe8] ss:$16 sps:$4 sm:$0xff]   ;;  %v5106_v32 = vld [vmem:[%s7641_s2 + $0x104] ss:$16 sps:$4 sm:$0xff]  }
   0xc   :  { %1289 = vmatprep.subr.bf16.mxu0 %v5076_v12  ;;  %1461 = vmatprep.subr.bf16.mxu1 %v5078_v13  ;;  %v5108_v33 = vld [vmem:[%s7641_s2 + $0x10c] ss:$16 sps:$4 sm:$0xff]   ;;  %v5110_v34 = vld [vmem:[%s7641_s2 + $0x100] ss:$16 sps:$4 sm:$0xff]   ;;  %v5111_v35 = vld [vmem:[%s7641_s2 + $0x108] ss:$16 sps:$4 sm:$0xff]  }
   0xd   :  { %v5112_v36 = vld [vmem:[%s7641_s2 + $0x124] ss:$16 sps:$4 sm:$0xff]   ;;  %v5114_v37 = vld [vmem:[%s7641_s2 + $0x12c] ss:$16 sps:$4 sm:$0xff]   ;;  %v5116_v38 = vld [vmem:[%s7641_s2 + $0x120] ss:$16 sps:$4 sm:$0xff]  }
   0xe   :  { %v5117_v39 = vld [vmem:[%s7641_s2 + $0x128] ss:$16 sps:$4 sm:$0xff]   ;;  %v5118_v40 = vld [vmem:[%s7641_s2 + $0x144] ss:$16 sps:$4 sm:$0xff]   ;;  %v5120_v41 = vld [vmem:[%s7641_s2 + $0x14c] ss:$16 sps:$4 sm:$0xff]  }
   0xf   :  { %1290 = vmatpush1.bf16.msra.mxu0 %v5080_v14  ;;  %1462 = vmatpush1.bf16.msra.mxu1 %v5081_v15  ;;  %v5122_v42 = vld [vmem:[%s7641_s2 + $0x140] ss:$16 sps:$4 sm:$0xff]   ;;  %v5123_v43 = vld [vmem:[%s7641_s2 + $0x148] ss:$16 sps:$4 sm:$0xff]   ;;  %v5124_v44 = vld [vmem:[%s7641_s2 + $0x164] ss:$16 sps:$4 sm:$0xff]  }
  0x10   :  { %1291 = vmatprep.subr.bf16.mxu0 %v5082_v16  ;;  %1463 = vmatprep.subr.bf16.mxu1 %v5084_v17  ;;  %v5126_v45 = vld [vmem:[%s7641_s2 + $0x16c] ss:$16 sps:$4 sm:$0xff]   ;;  %v5128_v46 = vld [vmem:[%s7641_s2 + $0x160] ss:$16 sps:$4 sm:$0xff]   ;;  %v5129_v47 = vld [vmem:[%s7641_s2 + $0x168] ss:$16 sps:$4 sm:$0xff]  }
  0x11   :  { %v5156_v48 = vld [vmem:[%s7642_s0 + $0x4] ss:$28 sps:$4 sm:$0xff]   ;;  %v5132_v50 = vld [vmem:[%s7641_s2 + $0x18c] ss:$16 sps:$4 sm:$0xff]   ;;  %v5135_v52 = vld [vmem:[%s7641_s2 + $0x188] ss:$16 sps:$4 sm:$0xff]  }
  0x12   :  { %v5130_v49 = vld [vmem:[%s7641_s2 + $0x184] ss:$16 sps:$4 sm:$0xff]   ;;  %1315 = vmatprep.mubr.bf16.mxu0 %v5156_v48  ;;  %1487 = vmatprep.mubr.bf16.mxu1 %v5156_v48  ;;  %v5134_v51 = vld [vmem:[%s7641_s2 + $0x180] ss:$16 sps:$4 sm:$0xff]   ;;  %v5138_v54 = vld [vmem:[%s7641_s2 + $0x1ac] ss:$16 sps:$4 sm:$0xff]  }
  0x13   :  { %1292 = vmatpush1.bf16.msra.mxu0 %v5086_v18  ;;  %1464 = vmatpush1.bf16.msra.mxu1 %v5087_v19  ;;  %v5136_v53 = vld [vmem:[%s7641_s2 + $0x1a4] ss:$16 sps:$4 sm:$0xff]   ;;  %v5140_v55 = vld [vmem:[%s7641_s2 + $0x1a0] ss:$16 sps:$4 sm:$0xff]   ;;  %v5141_v56 = vld [vmem:[%s7641_s2 + $0x1a8] ss:$16 sps:$4 sm:$0xff]  }
  0x14   :  { %1293 = vmatprep.subr.bf16.mxu0 %v5088_v20  ;;  %1465 = vmatprep.subr.bf16.mxu1 %v5090_v21  ;;  %v5142_v57 = vld [vmem:[%s7641_s2 + $0x1c4] ss:$16 sps:$4 sm:$0xff]   ;;  %v5144_v58 = vld [vmem:[%s7641_s2 + $0x1cc] ss:$16 sps:$4 sm:$0xff]   ;;  %v5146_v59 = vld [vmem:[%s7641_s2 + $0x1c0] ss:$16 sps:$4 sm:$0xff]  }
  0x15   :  { %v5147_v60 = vld [vmem:[%s7641_s2 + $0x1c8] ss:$16 sps:$4 sm:$0xff]   ;;  %v5148_v61 = vld [vmem:[%s7641_s2 + $0x1e4] ss:$16 sps:$4 sm:$0xff]   ;;  %v5150_v62 = vld [vmem:[%s7641_s2 + $0x1ec] ss:$16 sps:$4 sm:$0xff]  }
  0x16   :  { %v5152_v63 = vld [vmem:[%s7641_s2 + $0x1e0] ss:$16 sps:$4 sm:$0xff]   ;;  %v5153_v0 = vld [vmem:[%s7641_s2 + $0x1e8] ss:$16 sps:$4 sm:$0xff]   ;;  %v5159_v1 = vld [vmem:[%s7641_s2 + $0x204] ss:$16 sps:$4 sm:$0xff]  }
  0x17   :  { %1294 = vmatpush1.bf16.msra.mxu0 %v5092_v22  ;;  %1466 = vmatpush1.bf16.msra.mxu1 %v5093_v23  ;;  %v5162_v2 = vld [vmem:[%s7641_s2 + $0x20c] ss:$16 sps:$4 sm:$0xff]   ;;  %v5157_v4 = vld [vmem:[%s7641_s2 + $0x200] ss:$16 sps:$4 sm:$0xff]   ;;  %v5160_v5 = vld [vmem:[%s7641_s2 + $0x208] ss:$16 sps:$4 sm:$0xff]  }
  0x18   :  { %1295 = vmatprep.subr.bf16.mxu0 %v5094_v24  ;;  %1467 = vmatprep.subr.bf16.mxu1 %v5096_v25  ;;  %v5154_v3 = vld [vmem:[%s7642_s0] ss:$28 sps:$4 sm:$0xff]   ;;  %v5165_v6 = vld [vmem:[%s7641_s2 + $0x224] ss:$16 sps:$4 sm:$0xff]   ;;  %v5166_v9 = vld [vmem:[%s7641_s2 + $0x228] ss:$16 sps:$4 sm:$0xff]  }
  0x19   :  { %v5168_v7 = vld [vmem:[%s7641_s2 + $0x22c] ss:$16 sps:$4 sm:$0xff]   ;;  %v5163_v8 = vld [vmem:[%s7641_s2 + $0x220] ss:$16 sps:$4 sm:$0xff]   ;;  %v5171_v10 = vld [vmem:[%s7641_s2 + $0x244] ss:$16 sps:$4 sm:$0xff]  }
  0x1a   :  { %v5174_v11 = vld [vmem:[%s7641_s2 + $0x24c] ss:$16 sps:$4 sm:$0xff]   ;;  %v5169_v12 = vld [vmem:[%s7641_s2 + $0x240] ss:$16 sps:$4 sm:$0xff]   ;;  %v5172_v13 = vld [vmem:[%s7641_s2 + $0x248] ss:$16 sps:$4 sm:$0xff]  }
  0x1b   :  { %1296 = vmatpush1.bf16.msra.mxu0 %v5098_v26  ;;  %1468 = vmatpush1.bf16.msra.mxu1 %v5099_v27  ;;  %v5177_v14 = vld [vmem:[%s7641_s2 + $0x264] ss:$16 sps:$4 sm:$0xff]   ;;  %v5180_v15 = vld [vmem:[%s7641_s2 + $0x26c] ss:$16 sps:$4 sm:$0xff]   ;;  %v5175_v16 = vld [vmem:[%s7641_s2 + $0x260] ss:$16 sps:$4 sm:$0xff]  }
  0x1c   :  { %1297 = vmatprep.subr.bf16.mxu0 %v5100_v28  ;;  %1469 = vmatprep.subr.bf16.mxu1 %v5102_v29  ;;  %v5178_v17 = vld [vmem:[%s7641_s2 + $0x268] ss:$16 sps:$4 sm:$0xff]   ;;  %v5183_v18 = vld [vmem:[%s7641_s2 + $0x284] ss:$16 sps:$4 sm:$0xff]   ;;  %v5186_v19 = vld [vmem:[%s7641_s2 + $0x28c] ss:$16 sps:$4 sm:$0xff]  }
  0x1d   :  { %v5181_v20 = vld [vmem:[%s7641_s2 + $0x280] ss:$16 sps:$4 sm:$0xff]   ;;  %v5184_v21 = vld [vmem:[%s7641_s2 + $0x288] ss:$16 sps:$4 sm:$0xff]   ;;  %v5189_v22 = vld [vmem:[%s7641_s2 + $0x2a4] ss:$16 sps:$4 sm:$0xff]  }
  0x1e   :  { %v5192_v23 = vld [vmem:[%s7641_s2 + $0x2ac] ss:$16 sps:$4 sm:$0xff]   ;;  %v5187_v24 = vld [vmem:[%s7641_s2 + $0x2a0] ss:$16 sps:$4 sm:$0xff]   ;;  %v5190_v25 = vld [vmem:[%s7641_s2 + $0x2a8] ss:$16 sps:$4 sm:$0xff]  }
  0x1f   :  { %1298 = vmatpush1.bf16.msra.mxu0 %v5104_v30  ;;  %1470 = vmatpush1.bf16.msra.mxu1 %v5105_v31  ;;  %v5195_v26 = vld [vmem:[%s7641_s2 + $0x2c4] ss:$16 sps:$4 sm:$0xff]   ;;  %v5198_v27 = vld [vmem:[%s7641_s2 + $0x2cc] ss:$16 sps:$4 sm:$0xff]   ;;  %v5193_v28 = vld [vmem:[%s7641_s2 + $0x2c0] ss:$16 sps:$4 sm:$0xff]  }
  0x20   :  { %1299 = vmatprep.subr.bf16.mxu0 %v5106_v32  ;;  %1471 = vmatprep.subr.bf16.mxu1 %v5108_v33  ;;  %v5196_v29 = vld [vmem:[%s7641_s2 + $0x2c8] ss:$16 sps:$4 sm:$0xff]   ;;  %v5201_v31 = vld [vmem:[%s7641_s2 + $0x2e4] ss:$16 sps:$4 sm:$0xff]   ;;  %v5204_v32 = vld [vmem:[%s7641_s2 + $0x2ec] ss:$16 sps:$4 sm:$0xff]  }
  0x21   :  { %v5255_v30 = vld [vmem:[%s7642_s0 + $0xc] ss:$28 sps:$4 sm:$0xff]   ;;  %v5199_v33 = vld [vmem:[%s7641_s2 + $0x2e0] ss:$16 sps:$4 sm:$0xff]  }
  0x22   :  { %v5228_v48 = vld [vmem:[%s7641_s2 + $0x36c] ss:$16 sps:$4 sm:$0xff]  }
  0x23   :  { %1300 = vmatpush1.bf16.msra.mxu0 %v5110_v34  ;;  %1472 = vmatpush1.bf16.msra.mxu1 %v5111_v35  ;;  %v5202_v34 = vld [vmem:[%s7641_s2 + $0x2e8] ss:$16 sps:$4 sm:$0xff]   ;;  %v5207_v35 = vld [vmem:[%s7641_s2 + $0x304] ss:$16 sps:$4 sm:$0xff]  }
  0x24   :  { %1301 = vmatprep.subr.bf16.mxu0 %v5112_v36  ;;  %1473 = vmatprep.subr.bf16.mxu1 %v5114_v37  ;;  %v5210_v36 = vld [vmem:[%s7641_s2 + $0x30c] ss:$16 sps:$4 sm:$0xff]   ;;  %v5205_v37 = vld [vmem:[%s7641_s2 + $0x300] ss:$16 sps:$4 sm:$0xff]  }
  0x27   :  { %1302 = vmatpush1.bf16.msra.mxu0 %v5116_v38  ;;  %1474 = vmatpush1.bf16.msra.mxu1 %v5117_v39  ;;  %v5208_v38 = vld [vmem:[%s7641_s2 + $0x308] ss:$16 sps:$4 sm:$0xff]   ;;  %v5213_v39 = vld [vmem:[%s7641_s2 + $0x324] ss:$16 sps:$4 sm:$0xff]  }
  0x28   :  { %1303 = vmatprep.subr.bf16.mxu0 %v5118_v40  ;;  %1475 = vmatprep.subr.bf16.mxu1 %v5120_v41  ;;  %v5216_v40 = vld [vmem:[%s7641_s2 + $0x32c] ss:$16 sps:$4 sm:$0xff]   ;;  %v5211_v41 = vld [vmem:[%s7641_s2 + $0x320] ss:$16 sps:$4 sm:$0xff]  }
  0x2b   :  { %1304 = vmatpush1.bf16.msra.mxu0 %v5122_v42  ;;  %1476 = vmatpush1.bf16.msra.mxu1 %v5123_v43  ;;  %v5214_v42 = vld [vmem:[%s7641_s2 + $0x328] ss:$16 sps:$4 sm:$0xff]   ;;  %v5219_v43 = vld [vmem:[%s7641_s2 + $0x344] ss:$16 sps:$4 sm:$0xff]  }
  0x2c   :  { %1305 = vmatprep.subr.bf16.mxu0 %v5124_v44  ;;  %1477 = vmatprep.subr.bf16.mxu1 %v5126_v45  ;;  %v5222_v44 = vld [vmem:[%s7641_s2 + $0x34c] ss:$16 sps:$4 sm:$0xff]   ;;  %v5217_v45 = vld [vmem:[%s7641_s2 + $0x340] ss:$16 sps:$4 sm:$0xff]  }
  0x2f   :  { %1306 = vmatpush1.bf16.msra.mxu0 %v5128_v46  ;;  %1478 = vmatpush1.bf16.msra.mxu1 %v5129_v47  ;;  %v5220_v46 = vld [vmem:[%s7641_s2 + $0x348] ss:$16 sps:$4 sm:$0xff]   ;;  %v5225_v47 = vld [vmem:[%s7641_s2 + $0x364] ss:$16 sps:$4 sm:$0xff]  }
  0x30   :  { %1307 = vmatprep.subr.bf16.mxu0 %v5130_v49  ;;  %1479 = vmatprep.subr.bf16.mxu1 %v5132_v50  ;;  %v5223_v49 = vld [vmem:[%s7641_s2 + $0x360] ss:$16 sps:$4 sm:$0xff]   ;;  %v5226_v50 = vld [vmem:[%s7641_s2 + $0x368] ss:$16 sps:$4 sm:$0xff]  }
  0x33   :  { %1308 = vmatpush1.bf16.msra.mxu0 %v5134_v51  ;;  %1480 = vmatpush1.bf16.msra.mxu1 %v5135_v52  ;;  %v5231_v51 = vld [vmem:[%s7641_s2 + $0x384] ss:$16 sps:$4 sm:$0xff]   ;;  %v5234_v52 = vld [vmem:[%s7641_s2 + $0x38c] ss:$16 sps:$4 sm:$0xff]  }
  0x34   :  { %1309 = vmatprep.subr.bf16.mxu0 %v5136_v53  ;;  %1481 = vmatprep.subr.bf16.mxu1 %v5138_v54  ;;  %v5229_v53 = vld [vmem:[%s7641_s2 + $0x380] ss:$16 sps:$4 sm:$0xff]   ;;  %v5232_v54 = vld [vmem:[%s7641_s2 + $0x388] ss:$16 sps:$4 sm:$0xff]  }
  0x37   :  { %1310 = vmatpush1.bf16.msra.mxu0 %v5140_v55  ;;  %1482 = vmatpush1.bf16.msra.mxu1 %v5141_v56  ;;  %v5237_v55 = vld [vmem:[%s7641_s2 + $0x3a4] ss:$16 sps:$4 sm:$0xff]   ;;  %v5240_v56 = vld [vmem:[%s7641_s2 + $0x3ac] ss:$16 sps:$4 sm:$0xff]  }
  0x38   :  { %1311 = vmatprep.subr.bf16.mxu0 %v5142_v57  ;;  %1483 = vmatprep.subr.bf16.mxu1 %v5144_v58  ;;  %v5235_v57 = vld [vmem:[%s7641_s2 + $0x3a0] ss:$16 sps:$4 sm:$0xff]   ;;  %v5238_v58 = vld [vmem:[%s7641_s2 + $0x3a8] ss:$16 sps:$4 sm:$0xff]  }
  0x3b   :  { %1312 = vmatpush1.bf16.msra.mxu0 %v5146_v59  ;;  %1484 = vmatpush1.bf16.msra.mxu1 %v5147_v60  ;;  %v5243_v59 = vld [vmem:[%s7641_s2 + $0x3c4] ss:$16 sps:$4 sm:$0xff]   ;;  %v5246_v60 = vld [vmem:[%s7641_s2 + $0x3cc] ss:$16 sps:$4 sm:$0xff]  }
  0x3c   :  { %1313 = vmatprep.subr.bf16.mxu0 %v5148_v61  ;;  %1485 = vmatprep.subr.bf16.mxu1 %v5150_v62  ;;  %v5241_v61 = vld [vmem:[%s7641_s2 + $0x3c0] ss:$16 sps:$4 sm:$0xff]   ;;  %v5244_v62 = vld [vmem:[%s7641_s2 + $0x3c8] ss:$16 sps:$4 sm:$0xff]  }
  0x3f   :  { %1314 = vmatpush1.bf16.msra.mxu0 %v5152_v63  ;;  %1486 = vmatpush1.bf16.msra.mxu1 %v5153_v0  ;;  %v5249_v63 = vld [vmem:[%s7641_s2 + $0x3e4] ss:$16 sps:$4 sm:$0xff]   ;;  %v5252_v0 = vld [vmem:[%s7641_s2 + $0x3ec] ss:$16 sps:$4 sm:$0xff]  }
  0x40   :  { %1326 = vmatprep.subr.bf16.mxu0 %v5159_v1  ;;  %1498 = vmatprep.subr.bf16.mxu1 %v5162_v2  ;;  %v5247_v1 = vld [vmem:[%s7641_s2 + $0x3e0] ss:$16 sps:$4 sm:$0xff]   ;;  %v5250_v2 = vld [vmem:[%s7641_s2 + $0x3e8] ss:$16 sps:$4 sm:$0xff]  }
  0x42   :  { %1316 = vmatmul.mubr.bf16.vlgmr.msra.gmra.mrb[0].mxu0 %v5154_v3  ;;  %1488 = vmatmul.mubr.bf16.vlgmr.msra.gmra.mrb[0].mxu1 %v5154_v3  ;;  %v5258_v3 = vld [vmem:[%s7641_s2 + $0x404] ss:$16 sps:$4 sm:$0xff]  }
  0x43   :  { %1327 = vmatpush1.bf16.msra.mxu0 %v5157_v4  ;;  %1499 = vmatpush1.bf16.msra.mxu1 %v5160_v5  ;;  %v5261_v4 = vld [vmem:[%s7641_s2 + $0x40c] ss:$16 sps:$4 sm:$0xff]   ;;  %v5253_v5 = vld [vmem:[%s7642_s0 + $0x8] ss:$28 sps:$4 sm:$0xff]  }
  0x44   :  { %1328 = vmatprep.subr.bf16.mxu0 %v5165_v6  ;;  %1500 = vmatprep.subr.bf16.mxu1 %v5168_v7  ;;  %v5256_v6 = vld [vmem:[%s7641_s2 + $0x400] ss:$16 sps:$4 sm:$0xff]   ;;  %v5259_v7 = vld [vmem:[%s7641_s2 + $0x408] ss:$16 sps:$4 sm:$0xff]  }
  0x45   :  { %1358 = vmatprep.mubr.bf16.mxu0 %v5255_v30  ;;  %1530 = vmatprep.mubr.bf16.mxu1 %v5255_v30  ;;  %v5297_v30 = vld [vmem:[%s7641_s2 + $0x4cc] ss:$16 sps:$4 sm:$0xff]  }
  0x47   :  { %1329 = vmatpush1.bf16.msra.mxu0 %v5163_v8  ;;  %1501 = vmatpush1.bf16.msra.mxu1 %v5166_v9  ;;  %v5264_v8 = vld [vmem:[%s7641_s2 + $0x424] ss:$16 sps:$4 sm:$0xff]   ;;  %v5267_v9 = vld [vmem:[%s7641_s2 + $0x42c] ss:$16 sps:$4 sm:$0xff]  }
  0x48   :  { %1330 = vmatprep.subr.bf16.mxu0 %v5171_v10  ;;  %1502 = vmatprep.subr.bf16.mxu1 %v5174_v11  ;;  %v5262_v10 = vld [vmem:[%s7641_s2 + $0x420] ss:$16 sps:$4 sm:$0xff]   ;;  %v5265_v11 = vld [vmem:[%s7641_s2 + $0x428] ss:$16 sps:$4 sm:$0xff]  }
  0x4b   :  { %1331 = vmatpush1.bf16.msra.mxu0 %v5169_v12  ;;  %1503 = vmatpush1.bf16.msra.mxu1 %v5172_v13  ;;  %v5354_v12 = vld [vmem:[%s7642_s0 + $0x14] ss:$28 sps:$4 sm:$0xff]  }
  0x4c   :  { %1332 = vmatprep.subr.bf16.mxu0 %v5177_v14  ;;  %1504 = vmatprep.subr.bf16.mxu1 %v5180_v15  ;;  %v5270_v13 = vld [vmem:[%s7641_s2 + $0x444] ss:$16 sps:$4 sm:$0xff]   ;;  %v5273_v14 = vld [vmem:[%s7641_s2 + $0x44c] ss:$16 sps:$4 sm:$0xff]   ;;  %v5268_v15 = vld [vmem:[%s7641_s2 + $0x440] ss:$16 sps:$4 sm:$0xff]  }
  0x4f   :  { %1333 = vmatpush1.bf16.msra.mxu0 %v5175_v16  ;;  %1505 = vmatpush1.bf16.msra.mxu1 %v5178_v17  ;;  %v5271_v16 = vld [vmem:[%s7641_s2 + $0x448] ss:$16 sps:$4 sm:$0xff]   ;;  %v5276_v17 = vld [vmem:[%s7641_s2 + $0x464] ss:$16 sps:$4 sm:$0xff]  }
  0x50   :  { %1334 = vmatprep.subr.bf16.mxu0 %v5183_v18  ;;  %1506 = vmatprep.subr.bf16.mxu1 %v5186_v19  ;;  %v5279_v18 = vld [vmem:[%s7641_s2 + $0x46c] ss:$16 sps:$4 sm:$0xff]   ;;  %v5274_v19 = vld [vmem:[%s7641_s2 + $0x460] ss:$16 sps:$4 sm:$0xff]  }
  0x53   :  { %1335 = vmatpush1.bf16.msra.mxu0 %v5181_v20  ;;  %1507 = vmatpush1.bf16.msra.mxu1 %v5184_v21  ;;  %v5277_v20 = vld [vmem:[%s7641_s2 + $0x468] ss:$16 sps:$4 sm:$0xff]   ;;  %v5282_v21 = vld [vmem:[%s7641_s2 + $0x484] ss:$16 sps:$4 sm:$0xff]  }
  0x54   :  { %1336 = vmatprep.subr.bf16.mxu0 %v5189_v22  ;;  %1508 = vmatprep.subr.bf16.mxu1 %v5192_v23  ;;  %v5285_v22 = vld [vmem:[%s7641_s2 + $0x48c] ss:$16 sps:$4 sm:$0xff]   ;;  %v5280_v23 = vld [vmem:[%s7641_s2 + $0x480] ss:$16 sps:$4 sm:$0xff]  }
  0x57   :  { %1337 = vmatpush1.bf16.msra.mxu0 %v5187_v24  ;;  %1509 = vmatpush1.bf16.msra.mxu1 %v5190_v25  ;;  %v5283_v24 = vld [vmem:[%s7641_s2 + $0x488] ss:$16 sps:$4 sm:$0xff]   ;;  %v5288_v25 = vld [vmem:[%s7641_s2 + $0x4a4] ss:$16 sps:$4 sm:$0xff]  }
  0x58   :  { %1338 = vmatprep.subr.bf16.mxu0 %v5195_v26  ;;  %1510 = vmatprep.subr.bf16.mxu1 %v5198_v27  ;;  %v5291_v26 = vld [vmem:[%s7641_s2 + $0x4ac] ss:$16 sps:$4 sm:$0xff]   ;;  %v5286_v27 = vld [vmem:[%s7641_s2 + $0x4a0] ss:$16 sps:$4 sm:$0xff]  }
  0x5b   :  { %1339 = vmatpush1.bf16.msra.mxu0 %v5193_v28  ;;  %1511 = vmatpush1.bf16.msra.mxu1 %v5196_v29  ;;  %v5289_v28 = vld [vmem:[%s7641_s2 + $0x4a8] ss:$16 sps:$4 sm:$0xff]   ;;  %v5294_v29 = vld [vmem:[%s7641_s2 + $0x4c4] ss:$16 sps:$4 sm:$0xff]  }
  0x5c   :  { %1340 = vmatprep.subr.bf16.mxu0 %v5201_v31  ;;  %1512 = vmatprep.subr.bf16.mxu1 %v5204_v32  ;;  %v5292_v31 = vld [vmem:[%s7641_s2 + $0x4c0] ss:$16 sps:$4 sm:$0xff]   ;;  %v5295_v32 = vld [vmem:[%s7641_s2 + $0x4c8] ss:$16 sps:$4 sm:$0xff]  }
  0x5f   :  { %1341 = vmatpush1.bf16.msra.mxu0 %v5199_v33  ;;  %1513 = vmatpush1.bf16.msra.mxu1 %v5202_v34  ;;  %v5300_v33 = vld [vmem:[%s7641_s2 + $0x4e4] ss:$16 sps:$4 sm:$0xff]   ;;  %v5303_v34 = vld [vmem:[%s7641_s2 + $0x4ec] ss:$16 sps:$4 sm:$0xff]  }
  0x60   :  { %1342 = vmatprep.subr.bf16.mxu0 %v5207_v35  ;;  %1514 = vmatprep.subr.bf16.mxu1 %v5210_v36  ;;  %v5298_v35 = vld [vmem:[%s7641_s2 + $0x4e0] ss:$16 sps:$4 sm:$0xff]   ;;  %v5301_v36 = vld [vmem:[%s7641_s2 + $0x4e8] ss:$16 sps:$4 sm:$0xff]  }
  0x63   :  { %1343 = vmatpush1.bf16.msra.mxu0 %v5205_v37  ;;  %1515 = vmatpush1.bf16.msra.mxu1 %v5208_v38  ;;  %v5306_v37 = vld [vmem:[%s7641_s2 + $0x504] ss:$16 sps:$4 sm:$0xff]   ;;  %v5309_v38 = vld [vmem:[%s7641_s2 + $0x50c] ss:$16 sps:$4 sm:$0xff]  }
  0x64   :  { %1344 = vmatprep.subr.bf16.mxu0 %v5213_v39  ;;  %1516 = vmatprep.subr.bf16.mxu1 %v5216_v40  ;;  %v5304_v39 = vld [vmem:[%s7641_s2 + $0x500] ss:$16 sps:$4 sm:$0xff]   ;;  %v5307_v40 = vld [vmem:[%s7641_s2 + $0x508] ss:$16 sps:$4 sm:$0xff]  }
  0x67   :  { %1345 = vmatpush1.bf16.msra.mxu0 %v5211_v41  ;;  %1517 = vmatpush1.bf16.msra.mxu1 %v5214_v42  ;;  %v5312_v41 = vld [vmem:[%s7641_s2 + $0x524] ss:$16 sps:$4 sm:$0xff]   ;;  %v5315_v42 = vld [vmem:[%s7641_s2 + $0x52c] ss:$16 sps:$4 sm:$0xff]  }
  0x68   :  { %1346 = vmatprep.subr.bf16.mxu0 %v5219_v43  ;;  %1518 = vmatprep.subr.bf16.mxu1 %v5222_v44  ;;  %v5310_v43 = vld [vmem:[%s7641_s2 + $0x520] ss:$16 sps:$4 sm:$0xff]   ;;  %v5313_v44 = vld [vmem:[%s7641_s2 + $0x528] ss:$16 sps:$4 sm:$0xff]  }
  0x6b   :  { %1347 = vmatpush1.bf16.msra.mxu0 %v5217_v45  ;;  %1519 = vmatpush1.bf16.msra.mxu1 %v5220_v46  ;;  %v5318_v45 = vld [vmem:[%s7641_s2 + $0x544] ss:$16 sps:$4 sm:$0xff]   ;;  %v5321_v46 = vld [vmem:[%s7641_s2 + $0x54c] ss:$16 sps:$4 sm:$0xff]  }
  0x6c   :  { %1348 = vmatprep.subr.bf16.mxu0 %v5225_v47  ;;  %1520 = vmatprep.subr.bf16.mxu1 %v5228_v48  ;;  %v5316_v47 = vld [vmem:[%s7641_s2 + $0x540] ss:$16 sps:$4 sm:$0xff]   ;;  %v5319_v48 = vld [vmem:[%s7641_s2 + $0x548] ss:$16 sps:$4 sm:$0xff]  }
  0x6f   :  { %1349 = vmatpush1.bf16.msra.mxu0 %v5223_v49  ;;  %1521 = vmatpush1.bf16.msra.mxu1 %v5226_v50  ;;  %v5324_v49 = vld [vmem:[%s7641_s2 + $0x564] ss:$16 sps:$4 sm:$0xff]   ;;  %v5327_v50 = vld [vmem:[%s7641_s2 + $0x56c] ss:$16 sps:$4 sm:$0xff]  }
  0x70   :  { %1350 = vmatprep.subr.bf16.mxu0 %v5231_v51  ;;  %1522 = vmatprep.subr.bf16.mxu1 %v5234_v52  ;;  %v5322_v51 = vld [vmem:[%s7641_s2 + $0x560] ss:$16 sps:$4 sm:$0xff]   ;;  %v5325_v52 = vld [vmem:[%s7641_s2 + $0x568] ss:$16 sps:$4 sm:$0xff]  }
  0x73   :  { %1351 = vmatpush1.bf16.msra.mxu0 %v5229_v53  ;;  %1523 = vmatpush1.bf16.msra.mxu1 %v5232_v54  ;;  %v5330_v53 = vld [vmem:[%s7641_s2 + $0x584] ss:$16 sps:$4 sm:$0xff]   ;;  %v5333_v54 = vld [vmem:[%s7641_s2 + $0x58c] ss:$16 sps:$4 sm:$0xff]  }
  0x74   :  { %1352 = vmatprep.subr.bf16.mxu0 %v5237_v55  ;;  %1524 = vmatprep.subr.bf16.mxu1 %v5240_v56  ;;  %v5328_v55 = vld [vmem:[%s7641_s2 + $0x580] ss:$16 sps:$4 sm:$0xff]   ;;  %v5331_v56 = vld [vmem:[%s7641_s2 + $0x588] ss:$16 sps:$4 sm:$0xff]  }
  0x77   :  { %1353 = vmatpush1.bf16.msra.mxu0 %v5235_v57  ;;  %1525 = vmatpush1.bf16.msra.mxu1 %v5238_v58  ;;  %v5336_v57 = vld [vmem:[%s7641_s2 + $0x5a4] ss:$16 sps:$4 sm:$0xff]   ;;  %v5339_v58 = vld [vmem:[%s7641_s2 + $0x5ac] ss:$16 sps:$4 sm:$0xff]  }
  0x78   :  { %1354 = vmatprep.subr.bf16.mxu0 %v5243_v59  ;;  %1526 = vmatprep.subr.bf16.mxu1 %v5246_v60  ;;  %v5334_v59 = vld [vmem:[%s7641_s2 + $0x5a0] ss:$16 sps:$4 sm:$0xff]   ;;  %v5337_v60 = vld [vmem:[%s7641_s2 + $0x5a8] ss:$16 sps:$4 sm:$0xff]  }
  0x7b   :  { %1355 = vmatpush1.bf16.msra.mxu0 %v5241_v61  ;;  %1527 = vmatpush1.bf16.msra.mxu1 %v5244_v62  ;;  %v5342_v61 = vld [vmem:[%s7641_s2 + $0x5c4] ss:$16 sps:$4 sm:$0xff]   ;;  %v5345_v62 = vld [vmem:[%s7641_s2 + $0x5cc] ss:$16 sps:$4 sm:$0xff]  }
  0x7c   :  { %1356 = vmatprep.subr.bf16.mxu0 %v5249_v63  ;;  %1528 = vmatprep.subr.bf16.mxu1 %v5252_v0  ;;  %v5340_v63 = vld [vmem:[%s7641_s2 + $0x5c0] ss:$16 sps:$4 sm:$0xff]   ;;  %v5343_v0 = vld [vmem:[%s7641_s2 + $0x5c8] ss:$16 sps:$4 sm:$0xff]  }
  0x7f   :  { %1357 = vmatpush1.bf16.msra.mxu0 %v5247_v1  ;;  %1529 = vmatpush1.bf16.msra.mxu1 %v5250_v2  ;;  %v5348_v1 = vld [vmem:[%s7641_s2 + $0x5e4] ss:$16 sps:$4 sm:$0xff]   ;;  %v5351_v2 = vld [vmem:[%s7641_s2 + $0x5ec] ss:$16 sps:$4 sm:$0xff]  }
  0x80   :  { %1369 = vmatprep.subr.bf16.mxu0 %v5258_v3  ;;  %1541 = vmatprep.subr.bf16.mxu1 %v5261_v4  ;;  %v5346_v3 = vld [vmem:[%s7641_s2 + $0x5e0] ss:$16 sps:$4 sm:$0xff]   ;;  %v5349_v4 = vld [vmem:[%s7641_s2 + $0x5e8] ss:$16 sps:$4 sm:$0xff]  }
  0x82   :  { %1359 = vmatmul.mubr.bf16.vlgmr.msra.gmra.mrb[0].mxu0 %v5253_v5  ;;  %1531 = vmatmul.mubr.bf16.vlgmr.msra.gmra.mrb[0].mxu1 %v5253_v5  ;;  %v5357_v5 = vld [vmem:[%s7641_s2 + $0x604] ss:$16 sps:$4 sm:$0xff]  }
  0x83   :  { %1370 = vmatpush1.bf16.msra.mxu0 %v5256_v6  ;;  %1542 = vmatpush1.bf16.msra.mxu1 %v5259_v7  ;;  %v5360_v6 = vld [vmem:[%s7641_s2 + $0x60c] ss:$16 sps:$4 sm:$0xff]  }
  0x84   :  { %1371 = vmatprep.subr.bf16.mxu0 %v5264_v8  ;;  %1543 = vmatprep.subr.bf16.mxu1 %v5267_v9  ;;  %v5352_v7 = vld [vmem:[%s7642_s0 + $0x10] ss:$28 sps:$4 sm:$0xff]   ;;  %v5358_v9 = vld [vmem:[%s7641_s2 + $0x608] ss:$16 sps:$4 sm:$0xff]  }
  0x85   :  { %1401 = vmatprep.mubr.bf16.mxu0 %v5354_v12  ;;  %1573 = vmatprep.mubr.bf16.mxu1 %v5354_v12  ;;  %v5355_v8 = vld [vmem:[%s7641_s2 + $0x600] ss:$16 sps:$4 sm:$0xff]   ;;  %v5361_v12 = vld [vmem:[%s7642_s0 + $0x18] ss:$28 sps:$4 sm:$0xff]  }
  0x87   :  { %1372 = vmatpush1.bf16.msra.mxu0 %v5262_v10  ;;  %1544 = vmatpush1.bf16.msra.mxu1 %v5265_v11  ;;  %v5364_v10 = vld [vmem:[%s7643_s4 + $0x4] ss:$8 sps:$4 sm:$0xff]   ;;  %v5886_v11 = vmov 0  }
  0x88   :  { %1373 = vmatprep.subr.bf16.mxu0 %v5270_v13  ;;  %1545 = vmatprep.subr.bf16.mxu1 %v5273_v14  ;;  %v5362_v13 = vld [vmem:[%s7643_s4] ss:$8 sps:$4 sm:$0xff]   ;;  %v5367_v14 = vld [vmem:[%s7643_s4 + $0x14] ss:$8 sps:$4 sm:$0xff]  }
  0x8b   :  { %1374 = vmatpush1.bf16.msra.mxu0 %v5268_v15  ;;  %1546 = vmatpush1.bf16.msra.mxu1 %v5271_v16  ;;  %v5365_v15 = vld [vmem:[%s7643_s4 + $0x10] ss:$8 sps:$4 sm:$0xff]   ;;  %v5370_v16 = vld [vmem:[%s7643_s4 + $0x24] ss:$8 sps:$4 sm:$0xff]  }
  0x8c   :  { %1375 = vmatprep.subr.bf16.mxu0 %v5276_v17  ;;  %1547 = vmatprep.subr.bf16.mxu1 %v5279_v18  ;;  %v5368_v17 = vld [vmem:[%s7643_s4 + $0x20] ss:$8 sps:$4 sm:$0xff]   ;;  %v5373_v18 = vld [vmem:[%s7643_s4 + $0x34] ss:$8 sps:$4 sm:$0xff]  }
  0x8f   :  { %1376 = vmatpush1.bf16.msra.mxu0 %v5274_v19  ;;  %1548 = vmatpush1.bf16.msra.mxu1 %v5277_v20  ;;  %v5371_v19 = vld [vmem:[%s7643_s4 + $0x30] ss:$8 sps:$4 sm:$0xff]   ;;  %v5376_v20 = vld [vmem:[%s7643_s4 + $0x44] ss:$8 sps:$4 sm:$0xff]  }
  0x90   :  { %1377 = vmatprep.subr.bf16.mxu0 %v5282_v21  ;;  %1549 = vmatprep.subr.bf16.mxu1 %v5285_v22  ;;  %v5374_v21 = vld [vmem:[%s7643_s4 + $0x40] ss:$8 sps:$4 sm:$0xff]   ;;  %v5379_v22 = vld [vmem:[%s7643_s4 + $0x54] ss:$8 sps:$4 sm:$0xff]  }
  0x93   :  { %1378 = vmatpush1.bf16.msra.mxu0 %v5280_v23  ;;  %1550 = vmatpush1.bf16.msra.mxu1 %v5283_v24  ;;  %v5377_v23 = vld [vmem:[%s7643_s4 + $0x50] ss:$8 sps:$4 sm:$0xff]   ;;  %v5382_v24 = vld [vmem:[%s7643_s4 + $0x64] ss:$8 sps:$4 sm:$0xff]  }
  0x94   :  { %1379 = vmatprep.subr.bf16.mxu0 %v5288_v25  ;;  %1551 = vmatprep.subr.bf16.mxu1 %v5291_v26  ;;  %v5380_v25 = vld [vmem:[%s7643_s4 + $0x60] ss:$8 sps:$4 sm:$0xff]   ;;  %v5385_v26 = vld [vmem:[%s7643_s4 + $0x74] ss:$8 sps:$4 sm:$0xff]  }
  0x97   :  { %1380 = vmatpush1.bf16.msra.mxu0 %v5286_v27  ;;  %1552 = vmatpush1.bf16.msra.mxu1 %v5289_v28  ;;  %v5383_v27 = vld [vmem:[%s7643_s4 + $0x70] ss:$8 sps:$4 sm:$0xff]   ;;  %v5388_v28 = vld [vmem:[%s7643_s4 + $0x84] ss:$8 sps:$4 sm:$0xff]  }
  0x98   :  { %1381 = vmatprep.subr.bf16.mxu0 %v5294_v29  ;;  %1553 = vmatprep.subr.bf16.mxu1 %v5297_v30  ;;  %v5386_v29 = vld [vmem:[%s7643_s4 + $0x80] ss:$8 sps:$4 sm:$0xff]   ;;  %v5391_v30 = vld [vmem:[%s7643_s4 + $0x94] ss:$8 sps:$4 sm:$0xff]  }
  0x9b   :  { %1382 = vmatpush1.bf16.msra.mxu0 %v5292_v31  ;;  %1554 = vmatpush1.bf16.msra.mxu1 %v5295_v32  ;;  %v5389_v31 = vld [vmem:[%s7643_s4 + $0x90] ss:$8 sps:$4 sm:$0xff]   ;;  %v5394_v32 = vld [vmem:[%s7643_s4 + $0xa4] ss:$8 sps:$4 sm:$0xff]  }
  0x9c   :  { %1383 = vmatprep.subr.bf16.mxu0 %v5300_v33  ;;  %1555 = vmatprep.subr.bf16.mxu1 %v5303_v34  ;;  %v5392_v33 = vld [vmem:[%s7643_s4 + $0xa0] ss:$8 sps:$4 sm:$0xff]   ;;  %v5397_v34 = vld [vmem:[%s7643_s4 + $0xb4] ss:$8 sps:$4 sm:$0xff]  }
  0x9f   :  { %1384 = vmatpush1.bf16.msra.mxu0 %v5298_v35  ;;  %1556 = vmatpush1.bf16.msra.mxu1 %v5301_v36  ;;  %v5395_v35 = vld [vmem:[%s7643_s4 + $0xb0] ss:$8 sps:$4 sm:$0xff]   ;;  %v5400_v36 = vld [vmem:[%s7643_s4 + $0xc4] ss:$8 sps:$4 sm:$0xff]  }
  0xa0   :  { %1385 = vmatprep.subr.bf16.mxu0 %v5306_v37  ;;  %1557 = vmatprep.subr.bf16.mxu1 %v5309_v38  ;;  %v5398_v37 = vld [vmem:[%s7643_s4 + $0xc0] ss:$8 sps:$4 sm:$0xff]   ;;  %v5403_v38 = vld [vmem:[%s7643_s4 + $0xd4] ss:$8 sps:$4 sm:$0xff]  }
  0xa3   :  { %1386 = vmatpush1.bf16.msra.mxu0 %v5304_v39  ;;  %1558 = vmatpush1.bf16.msra.mxu1 %v5307_v40  ;;  %v5401_v39 = vld [vmem:[%s7643_s4 + $0xd0] ss:$8 sps:$4 sm:$0xff]   ;;  %v5406_v40 = vld [vmem:[%s7643_s4 + $0xe4] ss:$8 sps:$4 sm:$0xff]  }
  0xa4   :  { %1387 = vmatprep.subr.bf16.mxu0 %v5312_v41  ;;  %1559 = vmatprep.subr.bf16.mxu1 %v5315_v42  ;;  %v5404_v41 = vld [vmem:[%s7643_s4 + $0xe0] ss:$8 sps:$4 sm:$0xff]   ;;  %v5409_v42 = vld [vmem:[%s7643_s4 + $0xf4] ss:$8 sps:$4 sm:$0xff]  }
  0xa7   :  { %1388 = vmatpush1.bf16.msra.mxu0 %v5310_v43  ;;  %1560 = vmatpush1.bf16.msra.mxu1 %v5313_v44  ;;  %v5407_v43 = vld [vmem:[%s7643_s4 + $0xf0] ss:$8 sps:$4 sm:$0xff]   ;;  %v5412_v44 = vld [vmem:[%s7643_s4 + $0x104] ss:$8 sps:$4 sm:$0xff]  }
  0xa8   :  { %1389 = vmatprep.subr.bf16.mxu0 %v5318_v45  ;;  %1561 = vmatprep.subr.bf16.mxu1 %v5321_v46  ;;  %v5458_v45 = vld [vmem:[%s7644_s6] ss:$16 sps:$4 sm:$0xff]   ;;  %v5460_v46 = vld [vmem:[%s7644_s6 + $0x4] ss:$16 sps:$4 sm:$0xff]  }
  0xab   :  { %1390 = vmatpush1.bf16.msra.mxu0 %v5316_v47  ;;  %1562 = vmatpush1.bf16.msra.mxu1 %v5319_v48  ;;  %v5461_v47 = vld [vmem:[%s7644_s6 + $0x20] ss:$16 sps:$4 sm:$0xff]   ;;  %v5463_v48 = vld [vmem:[%s7644_s6 + $0x24] ss:$16 sps:$4 sm:$0xff]  }
  0xac   :  { %1391 = vmatprep.subr.bf16.mxu0 %v5324_v49  ;;  %1563 = vmatprep.subr.bf16.mxu1 %v5327_v50  ;;  %v244_v49 = vlaneseq }
  0xae   :  { %v6670_v50 = vshrl.u32 %v244_v49, 7  ;;  %v5446_v49 = vld [vmem:[%s7643_s4 + $0x1c0] ss:$8 sps:$4 sm:$0xff]  }
  0xaf   :  { %1392 = vmatpush1.bf16.msra.mxu0 %v5322_v51  ;;  %1564 = vmatpush1.bf16.msra.mxu1 %v5325_v52 }
  0xb0   :  { %1393 = vmatprep.subr.bf16.mxu0 %v5330_v53  ;;  %1565 = vmatprep.subr.bf16.mxu1 %v5333_v54  ;;  %v6673_v51 = vsub.s32 0, %v6670_v50  ;;  %v6676_v52 = vsub.s32 2, %v6670_v50  ;;  %v242_v53 = vld [vmem:[%s7645_s3] sm:$0xf]  ;;  %v6682_v54 = vsub.s32 1, %v6670_v50 }
  0xb3   :  { %1394 = vmatpush1.bf16.msra.mxu0 %v5328_v55  ;;  %1566 = vmatpush1.bf16.msra.mxu1 %v5331_v56  ;;  %v6685_v55 = vsub.s32 3, %v6670_v50  ;;  %v247_v56 = vrot.slane %v242_v53, %v6673_v51 }
  0xb4   :  { %1395 = vmatprep.subr.bf16.mxu0 %v5336_v57  ;;  %1567 = vmatprep.subr.bf16.mxu1 %v5339_v58  ;;  %v255_v57 = vrot.slane %v242_v53, %v6676_v52  ;;  %v251_v58 = vrot.slane %v242_v53, %v6682_v54 }
  0xb7   :  { %1396 = vmatpush1.bf16.msra.mxu0 %v5334_v59  ;;  %1568 = vmatpush1.bf16.msra.mxu1 %v5337_v60  ;;  %v259_v59 = vrot.slane %v242_v53, %v6685_v55  ;;  %v5451_v53 = vld [vmem:[%s7643_s4 + $0x1d4] ss:$8 sps:$4 sm:$0xff]  }
  0xb8   :  { %1397 = vmatprep.subr.bf16.mxu0 %v5342_v61  ;;  %1569 = vmatprep.subr.bf16.mxu1 %v5345_v62 }
  0xbb   :  { %1398 = vmatpush1.bf16.msra.mxu0 %v5340_v63  ;;  %1570 = vmatpush1.bf16.msra.mxu1 %v5343_v0 }
  0xbc   :  { %1399 = vmatprep.subr.bf16.mxu0 %v5348_v1  ;;  %1571 = vmatprep.subr.bf16.mxu1 %v5351_v2 }
  0xbf   :  { %1400 = vmatpush1.bf16.msra.mxu0 %v5346_v3  ;;  %1572 = vmatpush1.bf16.msra.mxu1 %v5349_v4 }
  0xc0   :  { %1412 = vmatprep.subr.bf16.mxu0 %v5357_v5  ;;  %1584 = vmatprep.subr.bf16.mxu1 %v5360_v6 }
  0xc2   :  { %1402 = vmatmul.mubr.bf16.vlgmr.msra.gmra.mrb[0].mxu0 %v5352_v7  ;;  %1574 = vmatmul.mubr.bf16.vlgmr.msra.gmra.mrb[0].mxu1 %v5352_v7 }
  0xc3   :  { %1413 = vmatpush1.bf16.msra.mxu0 %v5355_v8  ;;  %1585 = vmatpush1.bf16.msra.mxu1 %v5358_v9 }
  0xc4   :  { %1444 = vmatprep.mubr.bf16.mxu0 %v5886_v11  ;;  %1616 = vmatprep.mubr.bf16.mxu1 %v5886_v11 }
  0xc5   :  { %2035 = vmatprep.subr.bf16.mxu0 %v5364_v10  ;;  %2348 = vmatprep.subr.bf16.mxu1 %v5460_v46  ;;  %v5445_v46 = vld [vmem:[%s7643_s4 + $0x1b4] ss:$8 sps:$4 sm:$0xff]  }
  0xce   :  { %4593 = vmatmul.mubr.msk.bf16.vlgmr.msra.gmra.mrb[0].mxu0 %vm1279_vm0, %v5361_v12  ;;  %4594 = vmatmul.mubr.msk.bf16.vlgmr.msra.gmra.mrb[0].mxu1 %vm1279_vm0, %v5361_v12 }
  0xcf   :  { %2036 = vmatpush1.bf16.msra.mxu0 %v5362_v13  ;;  %2380 = vmatprep.mubr.bf16.mxu1 %v5886_v11 }
  0xd0   :  { %2037 = vmatprep.subr.bf16.mxu0 %v5367_v14  ;;  %2349 = vmatpush1.bf16.msra.mxu1 %v5458_v45  ;;  %v5440_v45 = vld [vmem:[%s7643_s4 + $0x1a0] ss:$8 sps:$4 sm:$0xff]  }
  0xd1   :  { %2350 = vmatprep.subr.bf16.mxu1 %v5463_v48  ;;  %v5448_v48 = vld [vmem:[%s7643_s4 + $0x1c4] ss:$8 sps:$4 sm:$0xff]  }
  0xd3   :  { %2038 = vmatpush1.bf16.msra.mxu0 %v5365_v15 }
  0xd4   :  { %2039 = vmatprep.subr.bf16.mxu0 %v5370_v16  ;;  %2351 = vmatpush1.bf16.msra.mxu1 %v5461_v47  ;;  %v5443_v47 = vld [vmem:[%s7643_s4 + $0x1b0] ss:$8 sps:$4 sm:$0xff]  }
  0xd7   :  { %2040 = vmatpush1.bf16.msra.mxu0 %v5368_v17 }
  0xd8   :  { %2041 = vmatprep.subr.bf16.mxu0 %v5373_v18 }
  0xdb   :  { %2042 = vmatpush1.bf16.msra.mxu0 %v5371_v19 }
  0xdc   :  { %2043 = vmatprep.subr.bf16.mxu0 %v5376_v20 }
  0xdf   :  { %2044 = vmatpush1.bf16.msra.mxu0 %v5374_v21 }
  0xe0   :  { %2045 = vmatprep.subr.bf16.mxu0 %v5379_v22 }
  0xe3   :  { %2046 = vmatpush1.bf16.msra.mxu0 %v5377_v23 }
  0xe4   :  { %2047 = vmatprep.subr.bf16.mxu0 %v5382_v24 }
  0xe7   :  { %2048 = vmatpush1.bf16.msra.mxu0 %v5380_v25  ;;  %v5410_v25 = vld [vmem:[%s7643_s4 + $0x100] ss:$8 sps:$4 sm:$0xff]  }
  0xe8   :  { %2049 = vmatprep.subr.bf16.mxu0 %v5385_v26  ;;  %v5415_v26 = vld [vmem:[%s7643_s4 + $0x114] ss:$8 sps:$4 sm:$0xff]  }
  0xeb   :  { %2050 = vmatpush1.bf16.msra.mxu0 %v5383_v27  ;;  %v5413_v27 = vld [vmem:[%s7643_s4 + $0x110] ss:$8 sps:$4 sm:$0xff]  }
  0xec   :  { %2051 = vmatprep.subr.bf16.mxu0 %v5388_v28  ;;  %v5418_v28 = vld [vmem:[%s7643_s4 + $0x124] ss:$8 sps:$4 sm:$0xff]  }
  0xef   :  { %2052 = vmatpush1.bf16.msra.mxu0 %v5386_v29  ;;  %v5416_v29 = vld [vmem:[%s7643_s4 + $0x120] ss:$8 sps:$4 sm:$0xff]  }
  0xf0   :  { %2053 = vmatprep.subr.bf16.mxu0 %v5391_v30  ;;  %v5421_v30 = vld [vmem:[%s7643_s4 + $0x134] ss:$8 sps:$4 sm:$0xff]  }
  0xf3   :  { %2054 = vmatpush1.bf16.msra.mxu0 %v5389_v31  ;;  %v5419_v31 = vld [vmem:[%s7643_s4 + $0x130] ss:$8 sps:$4 sm:$0xff]  }
  0xf4   :  { %2055 = vmatprep.subr.bf16.mxu0 %v5394_v32  ;;  %v5424_v32 = vld [vmem:[%s7643_s4 + $0x144] ss:$8 sps:$4 sm:$0xff]  }
  0xf7   :  { %2056 = vmatpush1.bf16.msra.mxu0 %v5392_v33  ;;  %v5422_v33 = vld [vmem:[%s7643_s4 + $0x140] ss:$8 sps:$4 sm:$0xff]  }
  0xf8   :  { %2057 = vmatprep.subr.bf16.mxu0 %v5397_v34  ;;  %v5427_v34 = vld [vmem:[%s7643_s4 + $0x154] ss:$8 sps:$4 sm:$0xff]  }
  0xfb   :  { %2058 = vmatpush1.bf16.msra.mxu0 %v5395_v35  ;;  %v5425_v35 = vld [vmem:[%s7643_s4 + $0x150] ss:$8 sps:$4 sm:$0xff]  }
  0xfc   :  { %2059 = vmatprep.subr.bf16.mxu0 %v5400_v36  ;;  %v5430_v36 = vld [vmem:[%s7643_s4 + $0x164] ss:$8 sps:$4 sm:$0xff]  }
  0xff   :  { %2060 = vmatpush1.bf16.msra.mxu0 %v5398_v37  ;;  %v5428_v37 = vld [vmem:[%s7643_s4 + $0x160] ss:$8 sps:$4 sm:$0xff]  }
 0x100   :  { %2061 = vmatprep.subr.bf16.mxu0 %v5403_v38  ;;  %v5433_v38 = vld [vmem:[%s7643_s4 + $0x174] ss:$8 sps:$4 sm:$0xff]  }
 0x103   :  { %2062 = vmatpush1.bf16.msra.mxu0 %v5401_v39  ;;  %v5431_v39 = vld [vmem:[%s7643_s4 + $0x170] ss:$8 sps:$4 sm:$0xff]  }
 0x104   :  { %2063 = vmatprep.subr.bf16.mxu0 %v5406_v40  ;;  %v5436_v40 = vld [vmem:[%s7643_s4 + $0x184] ss:$8 sps:$4 sm:$0xff]  }
 0x107   :  { %2064 = vmatpush1.bf16.msra.mxu0 %v5404_v41  ;;  %v5434_v41 = vld [vmem:[%s7643_s4 + $0x180] ss:$8 sps:$4 sm:$0xff]  }
 0x108   :  { %2065 = vmatprep.subr.bf16.mxu0 %v5409_v42  ;;  %v5439_v42 = vld [vmem:[%s7643_s4 + $0x194] ss:$8 sps:$4 sm:$0xff]  }
 0x10b   :  { %2066 = vmatpush1.bf16.msra.mxu0 %v5407_v43  ;;  %v5437_v43 = vld [vmem:[%s7643_s4 + $0x190] ss:$8 sps:$4 sm:$0xff]  }
 0x10c   :  { %2078 = vmatprep.subr.bf16.mxu0 %v5412_v44  ;;  %v5442_v44 = vld [vmem:[%s7643_s4 + $0x1a4] ss:$8 sps:$4 sm:$0xff]  }
 0x1a1   :  { %v1446_v60 = vpop.f32.mrb[0].mxu0  ;;  %v1618_v61 = vpop.f32.mrb[0].mxu1 }
 0x1a2   :  { %v4993_v62 = vadd.f32 %v1446_v60, %v247_v56  ;;  %v4997_v63 = vadd.f32 %v1618_v61, %v255_v57  ;;  %v1448_v0 = vpop.f32.mrb[1].mxu0  ;;  %v1620_v1 = vpop.f32.mrb[1].mxu1  ;;  %v5455_v60 = vld [vmem:[%s7643_s4 + $0x1f0] ss:$8 sps:$4 sm:$0xff]   ;;  %v5466_v61 = vld [vmem:[%s7644_s6 + $0x44] ss:$16 sps:$4 sm:$0xff]  }
 0x1a3   :  { %v4994_v2 = vadd.f32 %v1448_v0, %v251_v58  ;;  %v4998_v3 = vadd.f32 %v1620_v1, %v259_v59  ;;  %v1450_v4 = vpop.f32.mrb[2].mxu0  ;;  %v1622_v5 = vpop.f32.mrb[2].mxu1  ;;  %2352 = vmatprep.subr.bf16.mxu1 %v5466_v61  ;;  %v5467_v0 = vld [vmem:[%s7644_s6 + $0x60] ss:$16 sps:$4 sm:$0xff]   ;;  %v5472_v1 = vld [vmem:[%s7644_s6 + $0x84] ss:$16 sps:$4 sm:$0xff]  }
 0x1a4   :  { %v4995_v6 = vadd.f32 %v1450_v4, %v247_v56  ;;  %v4999_v7 = vadd.f32 %v1622_v5, %v255_v57  ;;  %v1452_v8 = vpop.f32.mrb[3].mxu0  ;;  %v1624_v9 = vpop.f32.mrb[3].mxu1  ;;  %v1627_v13 = vmax.f32 %v4993_v62, 0.0  ;;  %v1629_v14 = vmax.f32 %v4997_v63, 0.0  ;;  %v5449_v56 = vld [vmem:[%s7643_s4 + $0x1d0] ss:$8 sps:$4 sm:$0xff]  }
 0x1a5   :  { %v4996_v10 = vadd.f32 %v1452_v8, %v251_v58  ;;  %v5000_v12 = vadd.f32 %v1624_v9, %v259_v59  ;;  %v1628_v17 = vmax.f32 %v4994_v2, 0.0  ;;  %v1630_v18 = vmax.f32 %v4998_v3, 0.0  ;;  %v5454_v57 = vld [vmem:[%s7643_s4 + $0x1e4] ss:$8 sps:$4 sm:$0xff]   ;;  %v5452_v58 = vld [vmem:[%s7643_s4 + $0x1e0] ss:$8 sps:$4 sm:$0xff]  }
 0x1a6   :  { %v1631_v15 = vmax.f32 %v4995_v6, 0.0  ;;  %v1633_v16 = vmax.f32 %v4999_v7, 0.0  ;;  %v5457_v59 = vld [vmem:[%s7643_s4 + $0x1f4] ss:$8 sps:$4 sm:$0xff]   ;;  %v5464_v62 = vld [vmem:[%s7644_s6 + $0x40] ss:$16 sps:$4 sm:$0xff]  }
 0x1a7   :  { %v1632_v19 = vmax.f32 %v4996_v10, 0.0  ;;  %v1634_v20 = vmax.f32 %v5000_v12, 0.0  ;;  %2353 = vmatpush1.bf16.msra.mxu1 %v5464_v62  ;;  %v5469_v63 = vld [vmem:[%s7644_s6 + $0x64] ss:$16 sps:$4 sm:$0xff]   ;;  %v5470_v2 = vld [vmem:[%s7644_s6 + $0x80] ss:$16 sps:$4 sm:$0xff]  }
 0x1a8   :  { %v1635_v21 = vpack.c.bf16 %v1631_v15, %v1627_v13  ;;  %v6691_v22 = vpack.c.bf16 %v1633_v16, %v1629_v14  ;;  %2354 = vmatprep.subr.bf16.mxu1 %v5469_v63  ;;  %v5475_v3 = vld [vmem:[%s7644_s6 + $0xa4] ss:$16 sps:$4 sm:$0xff]   ;;  %v5473_v4 = vld [vmem:[%s7644_s6 + $0xa0] ss:$16 sps:$4 sm:$0xff]   ;;  %v5484_v9 = vld [vmem:[%s7644_s6 + $0xc] ss:$16 sps:$4 sm:$0xff]  }
 0x1a9   :  { %v1636_v23 = vpack.c.bf16 %v1632_v19, %v1628_v17  ;;  %v1638_v24 = vpack.c.bf16 %v1634_v20, %v1630_v18  ;;  %v5478_v5 = vld [vmem:[%s7644_s6 + $0xc4] ss:$16 sps:$4 sm:$0xff]   ;;  %v5476_v6 = vld [vmem:[%s7644_s6 + $0xc0] ss:$16 sps:$4 sm:$0xff]   ;;  %v5511_v12 = vld [vmem:[%s7646_s8 + $0xc] ss:$28 sps:$4 sm:$0xff]  }
 0x1aa   :  { %v5481_v7 = vld [vmem:[%s7644_s6 + $0xe4] ss:$16 sps:$4 sm:$0xff]   ;;  %v5479_v8 = vld [vmem:[%s7644_s6 + $0xe0] ss:$16 sps:$4 sm:$0xff]   ;;  %v5523_v15 = vld [vmem:[%s7646_s8 + $0x7c] ss:$28 sps:$4 sm:$0xff]  }
 0x1ab   :  { %2067 = vmatprep.mubr.bf16.mxu0 %v1636_v23  ;;  %2355 = vmatpush1.bf16.msra.mxu1 %v5467_v0  ;;  %v5509_v10 = vld [vmem:[%s7646_s8 + $0x8] ss:$28 sps:$4 sm:$0xff]   ;;  %v5515_v13 = vld [vmem:[%s7646_s8 + $0x40] ss:$28 sps:$4 sm:$0xff]   ;;  %v5521_v16 = vld [vmem:[%s7646_s8 + $0x78] ss:$28 sps:$4 sm:$0xff]  }
 0x1ac   :  { %2068 = vmatmul.mubr.bf16.vlgmr.msra.gmra.mrb[4].mxu0 %v1635_v21  ;;  %2356 = vmatprep.subr.bf16.mxu1 %v5472_v1  ;;  %v5517_v14 = vld [vmem:[%s7646_s8 + $0x44] ss:$28 sps:$4 sm:$0xff]   ;;  %v5529_v17 = vld [vmem:[%s7646_s8 + $0xb4] ss:$28 sps:$4 sm:$0xff]   ;;  %v5535_v19 = vld [vmem:[%s7646_s8 + $0xec] ss:$28 sps:$4 sm:$0xff]  }
 0x1ad   :  { %2079 = vmatpush1.bf16.msra.mxu0 %v5410_v25  ;;  %2110 = vmatprep.mubr.bf16.mxu0 %v1638_v24  ;;  %v5527_v18 = vld [vmem:[%s7646_s8 + $0xb0] ss:$28 sps:$4 sm:$0xff]   ;;  %v5533_v20 = vld [vmem:[%s7646_s8 + $0xe8] ss:$28 sps:$4 sm:$0xff]   ;;  %v5547_v23 = vld [vmem:[%s7646_s8 + $0x15c] ss:$28 sps:$4 sm:$0xff]  }
 0x1ae   :  { %2080 = vmatprep.subr.bf16.mxu0 %v5415_v26  ;;  %v5541_v21 = vld [vmem:[%s7646_s8 + $0x124] ss:$28 sps:$4 sm:$0xff]   ;;  %v5545_v24 = vld [vmem:[%s7646_s8 + $0x158] ss:$28 sps:$4 sm:$0xff]   ;;  %v5551_v26 = vld [vmem:[%s7646_s8 + $0x190] ss:$28 sps:$4 sm:$0xff]  }
 0x1af   :  { %2357 = vmatpush1.bf16.msra.mxu1 %v5470_v2  ;;  %v5553_v25 = vld [vmem:[%s7646_s8 + $0x194] ss:$28 sps:$4 sm:$0xff]   ;;  %v2121_v61 = vld [vmem:[%s7649_s1] sm:$0xff]  ;;  %v2122_v62 = vld [vmem:[%s7649_s1 + $0x8] sm:$0xff] }
 0x1b0   :  { %2358 = vmatprep.subr.bf16.mxu1 %v5475_v3 }
 0x1b1   :  { %2081 = vmatpush1.bf16.msra.mxu0 %v5413_v27  ;;  %v5559_v27 = vld [vmem:[%s7646_s8 + $0x1cc] ss:$28 sps:$4 sm:$0xff]  }
 0x1b2   :  { %2082 = vmatprep.subr.bf16.mxu0 %v5418_v28  ;;  %v5557_v28 = vld [vmem:[%s7646_s8 + $0x1c8] ss:$28 sps:$4 sm:$0xff]  }
 0x1b3   :  { %2359 = vmatpush1.bf16.msra.mxu1 %v5473_v4  ;;  %v5482_v4 = vld [vmem:[%s7644_s6 + $0x8] ss:$16 sps:$4 sm:$0xff]  }
 0x1b4   :  { %2360 = vmatprep.subr.bf16.mxu1 %v5478_v5 }
 0x1b5   :  { %2083 = vmatpush1.bf16.msra.mxu0 %v5416_v29  ;;  %v5565_v29 = vld [vmem:[%s7646_s8 + $0x204] ss:$28 sps:$4 sm:$0xff]  }
 0x1b6   :  { %2084 = vmatprep.subr.bf16.mxu0 %v5421_v30  ;;  %v5563_v30 = vld [vmem:[%s7646_s8 + $0x200] ss:$28 sps:$4 sm:$0xff]  }
 0x1b7   :  { %2361 = vmatpush1.bf16.msra.mxu1 %v5476_v6  ;;  %v5487_v6 = vld [vmem:[%s7644_s6 + $0x2c] ss:$16 sps:$4 sm:$0xff]  }
 0x1b8   :  { %2362 = vmatprep.subr.bf16.mxu1 %v5481_v7 }
 0x1b9   :  { %2085 = vmatpush1.bf16.msra.mxu0 %v5419_v31  ;;  %v5571_v31 = vld [vmem:[%s7646_s8 + $0x23c] ss:$28 sps:$4 sm:$0xff]  }
 0x1ba   :  { %2086 = vmatprep.subr.bf16.mxu0 %v5424_v32  ;;  %v5569_v32 = vld [vmem:[%s7646_s8 + $0x238] ss:$28 sps:$4 sm:$0xff]  }
 0x1bb   :  { %2363 = vmatpush1.bf16.msra.mxu1 %v5479_v8  ;;  %v5485_v8 = vld [vmem:[%s7644_s6 + $0x28] ss:$16 sps:$4 sm:$0xff]  }
 0x1bc   :  { %2391 = vmatprep.subr.bf16.mxu1 %v5484_v9  ;;  %v5490_v9 = vld [vmem:[%s7644_s6 + $0x4c] ss:$16 sps:$4 sm:$0xff]  }
 0x1bd   :  { %2087 = vmatpush1.bf16.msra.mxu0 %v5422_v33  ;;  %v5577_v33 = vld [vmem:[%s7646_s8 + $0x274] ss:$28 sps:$4 sm:$0xff]  }
 0x1be   :  { %2088 = vmatprep.subr.bf16.mxu0 %v5427_v34  ;;  %v5575_v34 = vld [vmem:[%s7646_s8 + $0x270] ss:$28 sps:$4 sm:$0xff]  }
 0x1c1   :  { %2089 = vmatpush1.bf16.msra.mxu0 %v5425_v35  ;;  %v5583_v35 = vld [vmem:[%s7646_s8 + $0x2ac] ss:$28 sps:$4 sm:$0xff]  }
 0x1c2   :  { %2090 = vmatprep.subr.bf16.mxu0 %v5430_v36  ;;  %v5581_v36 = vld [vmem:[%s7646_s8 + $0x2a8] ss:$28 sps:$4 sm:$0xff]  }
 0x1c5   :  { %2091 = vmatpush1.bf16.msra.mxu0 %v5428_v37  ;;  %v5589_v37 = vld [vmem:[%s7646_s8 + $0x2e4] ss:$28 sps:$4 sm:$0xff]  }
 0x1c6   :  { %2092 = vmatprep.subr.bf16.mxu0 %v5433_v38  ;;  %v5587_v38 = vld [vmem:[%s7646_s8 + $0x2e0] ss:$28 sps:$4 sm:$0xff]  }
 0x1c9   :  { %2093 = vmatpush1.bf16.msra.mxu0 %v5431_v39  ;;  %v1703_v39 = vld [vmem:[%s7647_s5] sm:$0x3] }
 0x1ca   :  { %2094 = vmatprep.subr.bf16.mxu0 %v5436_v40  ;;  %v1708_v40 = vrot.slane %v1703_v39, %v6673_v51 }
 0x1cd   :  { %2095 = vmatpush1.bf16.msra.mxu0 %v5434_v41  ;;  %v1712_v41 = vrot.slane %v1703_v39, %v6682_v54  ;;  %v5562_v39 = vld [vmem:[%s7646_s8 + $0x1fc] ss:$28 sps:$4 sm:$0xff]  }
 0x1ce   :  { %2096 = vmatprep.subr.bf16.mxu0 %v5439_v42 }
 0x1d1   :  { %2097 = vmatpush1.bf16.msra.mxu0 %v5437_v43 }
 0x1d2   :  { %2098 = vmatprep.subr.bf16.mxu0 %v5442_v44 }
 0x1d5   :  { %2099 = vmatpush1.bf16.msra.mxu0 %v5440_v45 }
 0x1d6   :  { %2100 = vmatprep.subr.bf16.mxu0 %v5445_v46 }
 0x1d9   :  { %2101 = vmatpush1.bf16.msra.mxu0 %v5443_v47 }
 0x1da   :  { %2102 = vmatprep.subr.bf16.mxu0 %v5448_v48 }
 0x1dd   :  { %2103 = vmatpush1.bf16.msra.mxu0 %v5446_v49 }
 0x1de   :  { %2104 = vmatprep.subr.bf16.mxu0 %v5451_v53 }
 0x1e1   :  { %2105 = vmatpush1.bf16.msra.mxu0 %v5449_v56 }
 0x1e2   :  { %2106 = vmatprep.subr.bf16.mxu0 %v5454_v57 }
 0x1e5   :  { %2107 = vmatpush1.bf16.msra.mxu0 %v5452_v58 }
 0x1e6   :  { %2108 = vmatprep.subr.bf16.mxu0 %v5457_v59 }
 0x1e9   :  { %2109 = vmatpush1.bf16.msra.mxu0 %v5455_v60 }
 0x1ea   :  { %3977 = vmatprep.subr.bf16.mxu0 %v5511_v12  ;;  %v5493_v12 = vld [vmem:[%s7644_s6 + $0x6c] ss:$16 sps:$4 sm:$0xff]  }
 0x1ec   :  { %2111 = vmatmul.mubr.bf16.vlgmr.msra.gmra.mrb[4].mxu0 %v6691_v22  ;;  %v5539_v22 = vld [vmem:[%s7646_s8 + $0x120] ss:$28 sps:$4 sm:$0xff]  }
 0x1ed   :  { %3978 = vmatpush1.bf16.msra.mxu0 %v5509_v10  ;;  %v5488_v10 = vld [vmem:[%s7644_s6 + $0x48] ss:$16 sps:$4 sm:$0xff]  }
 0x1ee   :  { %3979 = vmatprep.subr.bf16.mxu0 %v5517_v14  ;;  %v5494_v14 = vld [vmem:[%s7644_s6 + $0x88] ss:$16 sps:$4 sm:$0xff]  }
 0x1f1   :  { %3980 = vmatpush1.bf16.msra.mxu0 %v5515_v13  ;;  %v5491_v13 = vld [vmem:[%s7644_s6 + $0x68] ss:$16 sps:$4 sm:$0xff]  }
 0x1f2   :  { %3981 = vmatprep.subr.bf16.mxu0 %v5523_v15  ;;  %v5499_v15 = vld [vmem:[%s7644_s6 + $0xac] ss:$16 sps:$4 sm:$0xff]  }
 0x1f5   :  { %3982 = vmatpush1.bf16.msra.mxu0 %v5521_v16  ;;  %v5497_v16 = vld [vmem:[%s7644_s6 + $0xa8] ss:$16 sps:$4 sm:$0xff]  }
 0x1f6   :  { %3983 = vmatprep.subr.bf16.mxu0 %v5529_v17  ;;  %v5502_v17 = vld [vmem:[%s7644_s6 + $0xcc] ss:$16 sps:$4 sm:$0xff]  }
 0x1f9   :  { %3984 = vmatpush1.bf16.msra.mxu0 %v5527_v18  ;;  %v5500_v18 = vld [vmem:[%s7644_s6 + $0xc8] ss:$16 sps:$4 sm:$0xff]  }
 0x1fa   :  { %3985 = vmatprep.subr.bf16.mxu0 %v5535_v19  ;;  %v5505_v19 = vld [vmem:[%s7644_s6 + $0xec] ss:$16 sps:$4 sm:$0xff]  }
 0x1fd   :  { %3986 = vmatpush1.bf16.msra.mxu0 %v5533_v20  ;;  %v5503_v20 = vld [vmem:[%s7644_s6 + $0xe8] ss:$16 sps:$4 sm:$0xff]  }
 0x1fe   :  { %3987 = vmatprep.subr.bf16.mxu0 %v5541_v21  ;;  %v5508_v21 = vld [vmem:[%s7646_s8 + $0x4] ss:$28 sps:$4 sm:$0xff]  }
 0x201   :  { %3988 = vmatpush1.bf16.msra.mxu0 %v5539_v22  ;;  %v5506_v22 = vld [vmem:[%s7646_s8] ss:$28 sps:$4 sm:$0xff]  }
 0x202   :  { %3989 = vmatprep.subr.bf16.mxu0 %v5547_v23  ;;  %v5514_v23 = vld [vmem:[%s7646_s8 + $0x3c] ss:$28 sps:$4 sm:$0xff]  }
 0x205   :  { %3990 = vmatpush1.bf16.msra.mxu0 %v5545_v24  ;;  %v5512_v24 = vld [vmem:[%s7646_s8 + $0x38] ss:$28 sps:$4 sm:$0xff]  }
 0x206   :  { %3991 = vmatprep.subr.bf16.mxu0 %v5553_v25  ;;  %v5520_v25 = vld [vmem:[%s7646_s8 + $0x74] ss:$28 sps:$4 sm:$0xff]  }
 0x209   :  { %3992 = vmatpush1.bf16.msra.mxu0 %v5551_v26  ;;  %v5518_v26 = vld [vmem:[%s7646_s8 + $0x70] ss:$28 sps:$4 sm:$0xff]  }
 0x20a   :  { %3993 = vmatprep.subr.bf16.mxu0 %v5559_v27  ;;  %v5526_v27 = vld [vmem:[%s7646_s8 + $0xac] ss:$28 sps:$4 sm:$0xff]  }
 0x20d   :  { %3994 = vmatpush1.bf16.msra.mxu0 %v5557_v28  ;;  %v5524_v28 = vld [vmem:[%s7646_s8 + $0xa8] ss:$28 sps:$4 sm:$0xff]  }
 0x20e   :  { %3995 = vmatprep.subr.bf16.mxu0 %v5565_v29  ;;  %v5532_v29 = vld [vmem:[%s7646_s8 + $0xe4] ss:$28 sps:$4 sm:$0xff]  }
 0x211   :  { %3996 = vmatpush1.bf16.msra.mxu0 %v5563_v30  ;;  %v5530_v30 = vld [vmem:[%s7646_s8 + $0xe0] ss:$28 sps:$4 sm:$0xff]  }
 0x212   :  { %3997 = vmatprep.subr.bf16.mxu0 %v5571_v31  ;;  %v5538_v31 = vld [vmem:[%s7646_s8 + $0x11c] ss:$28 sps:$4 sm:$0xff]  }
 0x215   :  { %3998 = vmatpush1.bf16.msra.mxu0 %v5569_v32  ;;  %v5536_v32 = vld [vmem:[%s7646_s8 + $0x118] ss:$28 sps:$4 sm:$0xff]  }
 0x216   :  { %3999 = vmatprep.subr.bf16.mxu0 %v5577_v33  ;;  %v5544_v33 = vld [vmem:[%s7646_s8 + $0x154] ss:$28 sps:$4 sm:$0xff]  }
 0x219   :  { %4000 = vmatpush1.bf16.msra.mxu0 %v5575_v34  ;;  %v5542_v34 = vld [vmem:[%s7646_s8 + $0x150] ss:$28 sps:$4 sm:$0xff]  }
 0x21a   :  { %4001 = vmatprep.subr.bf16.mxu0 %v5583_v35  ;;  %v5550_v35 = vld [vmem:[%s7646_s8 + $0x18c] ss:$28 sps:$4 sm:$0xff]  }
 0x21d   :  { %4002 = vmatpush1.bf16.msra.mxu0 %v5581_v36  ;;  %v5548_v36 = vld [vmem:[%s7646_s8 + $0x188] ss:$28 sps:$4 sm:$0xff]  }
 0x21e   :  { %4003 = vmatprep.subr.bf16.mxu0 %v5589_v37  ;;  %v5556_v37 = vld [vmem:[%s7646_s8 + $0x1c4] ss:$28 sps:$4 sm:$0xff]  }
 0x221   :  { %4004 = vmatpush1.bf16.msra.mxu0 %v5587_v38  ;;  %v5554_v38 = vld [vmem:[%s7646_s8 + $0x1c0] ss:$28 sps:$4 sm:$0xff]  }
 0x2bf   :  { %v2112_v42 = vpop.f32.mrb[4].mxu0 }
 0x2c0   :  { %v5001_v43 = vadd.f32 %v2112_v42, %v1708_v40  ;;  %v2114_v44 = vpop.f32.mrb[5].mxu0  ;;  %v5566_v42 = vld [vmem:[%s7646_s8 + $0x230] ss:$28 sps:$4 sm:$0xff]  }
 0x2c1   :  { %v5002_v45 = vadd.f32 %v2114_v44, %v1712_v41  ;;  %v2116_v46 = vpop.f32.mrb[6].mxu0  ;;  %v5572_v44 = vld [vmem:[%s7646_s8 + $0x268] ss:$28 sps:$4 sm:$0xff]  }
 0x2c2   :  { %v5003_v47 = vadd.f32 %v2116_v46, %v1708_v40  ;;  %v2118_v48 = vpop.f32.mrb[7].mxu0  ;;  %v5560_v40 = vld [vmem:[%s7646_s8 + $0x1f8] ss:$28 sps:$4 sm:$0xff]   ;;  %v5578_v46 = vld [vmem:[%s7646_s8 + $0x2a0] ss:$28 sps:$4 sm:$0xff]  }
 0x2c3   :  { %v2123_v49 = vmul.f32 0.5, %v5002_v45  ;;  %v4947_v53 = vpack.c.bf16 %v5002_v45, %v5001_v43  ;;  %v5004_v56 = vadd.f32 %v2118_v48, %v1712_v41  ;;  %v5568_v41 = vld [vmem:[%s7646_s8 + $0x234] ss:$28 sps:$4 sm:$0xff]   ;;  %v5580_v45 = vld [vmem:[%s7646_s8 + $0x2a4] ss:$28 sps:$4 sm:$0xff]  }
 0x2c4   :  { %v5584_v48 = vld [vmem:[%s7646_s8 + $0x2d8] ss:$28 sps:$4 sm:$0xff]  }
 0x2c5   :  { %v2125_v57 = vmul.f32 1.442695, %v2123_v49  ;;  %4380 = vst [vmem:[%s7648_s11] sm:$0xff] %v4947_v53  ;;  %v2124_v58 = vmul.f32 0.5, %v5004_v56  ;;  %v4948_v59 = vpack.c.bf16 %v5004_v56, %v5003_v47  ;;  %v5592_v49 = vld [vmem:[%s7646_s8 + $0x314] ss:$28 sps:$4 sm:$0xff]  }
 0x2c6   :  { %v5595_v53 = vld [vmem:[%s7646_s8 + $0x31c] ss:$28 sps:$4 sm:$0xff]   ;;  %v5590_v56 = vld [vmem:[%s7646_s8 + $0x310] ss:$28 sps:$4 sm:$0xff]  }
 0x2c7   :  { %5826 = vpow2.f32 %v2125_v57  ;;  %v2127_v60 = vmul.f32 1.442695, %v2124_v58  ;;  %4381 = vst [vmem:[%s7648_s11 + $0x8] sm:$0xff] %v4948_v59  ;;  %v5593_v57 = vld [vmem:[%s7646_s8 + $0x318] ss:$28 sps:$4 sm:$0xff]   ;;  %4005 = vmatprep.subr.bf16.mxu0 %v5595_v53 }
 0x2c8   :  { %4006 = vmatpush1.bf16.msra.mxu0 %v5593_v57  ;;  %v5598_v58 = vld [vmem:[%s7646_s8 + $0x34c] ss:$28 sps:$4 sm:$0xff]   ;;  %v5601_v59 = vld [vmem:[%s7646_s8 + $0x354] ss:$28 sps:$4 sm:$0xff]  }
 0x2c9   :  { %5828 = vpow2.f32 %v2127_v60  ;;  %v5596_v60 = vld [vmem:[%s7646_s8 + $0x348] ss:$28 sps:$4 sm:$0xff]   ;;  %4007 = vmatprep.subr.bf16.mxu0 %v5601_v59 }
 0x2d1   :  { %v5827_v63 = vpop.eup %5826 }
 0x2d2   :  { %v2129_v0 = vmul.f32 %v5827_v63, %v2121_v61  ;;  %v5599_v61 = vld [vmem:[%s7646_s8 + $0x350] ss:$28 sps:$4 sm:$0xff]  }
 0x2d3   :  { %v5829_v1 = vpop.eup %5828  ;;  %4008 = vmatpush1.bf16.msra.mxu0 %v5599_v61  ;;  %v5607_v63 = vld [vmem:[%s7646_s8 + $0x38c] ss:$28 sps:$4 sm:$0xff]  }
 0x2d4   :  { %v2130_v2 = vmul.f32 %v5829_v1, %v2122_v62  ;;  %v2131_v3 = vadd.f32 %v5001_v43, %v2129_v0  ;;  %v5574_v43 = vld [vmem:[%s7646_s8 + $0x26c] ss:$28 sps:$4 sm:$0xff]   ;;  %v5604_v62 = vld [vmem:[%s7646_s8 + $0x384] ss:$28 sps:$4 sm:$0xff]   ;;  %4020 = vmatprep.subr.bf16.mxu0 %v5607_v63 }
 0x2d5   :  { %v7090_v0 = vld [vmem:[%s7650_s7] sm:$0xf]  ;;  %v5647_v61 = vld [vmem:[%s7646_s8 + $0x510] ss:$28 sps:$4 sm:$0xff]  }
 0x2d6   :  { %v2132_v5 = vadd.f32 %v5003_v47, %v2130_v2  ;;  %v5586_v47 = vld [vmem:[%s7646_s8 + $0x2dc] ss:$28 sps:$4 sm:$0xff]   ;;  %v2171_v1 = vrot.slane %v7090_v0, %v6673_v51  ;;  %v2175_v2 = vrot.slane %v7090_v0, %v6682_v54 }
 0x2d8   :  { %v2133_v7 = vpack.c.bf16 %v2132_v5, %v2131_v3 }
 0x2da   :  { %2381 = vmatmul.mubr.bf16.vlgmr.msra.gmra.mrb[4].mxu1 %v2133_v7 }
 0x2db   :  { %2392 = vmatpush1.bf16.msra.mxu1 %v5482_v4  ;;  %2423 = vmatprep.mubr.bf16.mxu1 %v5886_v11  ;;  %v5496_v11 = vld [vmem:[%s7644_s6 + $0x8c] ss:$16 sps:$4 sm:$0xff]  }
 0x2dc   :  { %2393 = vmatprep.subr.bf16.mxu1 %v5487_v6 }
 0x2df   :  { %2394 = vmatpush1.bf16.msra.mxu1 %v5485_v8 }
 0x2e0   :  { %2395 = vmatprep.subr.bf16.mxu1 %v5490_v9 }
 0x2e3   :  { %2396 = vmatpush1.bf16.msra.mxu1 %v5488_v10 }
 0x2e4   :  { %2397 = vmatprep.subr.bf16.mxu1 %v5493_v12 }
 0x2e7   :  { %2398 = vmatpush1.bf16.msra.mxu1 %v5491_v13 }
 0x2e8   :  { %2399 = vmatprep.subr.bf16.mxu1 %v5496_v11 }
 0x2eb   :  { %2400 = vmatpush1.bf16.msra.mxu1 %v5494_v14 }
 0x2ec   :  { %2401 = vmatprep.subr.bf16.mxu1 %v5499_v15 }
 0x2ef   :  { %2402 = vmatpush1.bf16.msra.mxu1 %v5497_v16 }
 0x2f0   :  { %2403 = vmatprep.subr.bf16.mxu1 %v5502_v17  ;;  %v5602_v17 = vld [vmem:[%s7646_s8 + $0x380] ss:$28 sps:$4 sm:$0xff]  }
 0x2f3   :  { %2404 = vmatpush1.bf16.msra.mxu1 %v5500_v18  ;;  %v5605_v18 = vld [vmem:[%s7646_s8 + $0x388] ss:$28 sps:$4 sm:$0xff]  }
 0x2f4   :  { %2405 = vmatprep.subr.bf16.mxu1 %v5505_v19  ;;  %v5610_v19 = vld [vmem:[%s7646_s8 + $0x3bc] ss:$28 sps:$4 sm:$0xff]  }
 0x2f7   :  { %2406 = vmatpush1.bf16.msra.mxu1 %v5503_v20  ;;  %v5613_v20 = vld [vmem:[%s7646_s8 + $0x3c4] ss:$28 sps:$4 sm:$0xff]  }
 0x2f8   :  { %3891 = vmatprep.subr.bf16.mxu1 %v5508_v21  ;;  %v5608_v21 = vld [vmem:[%s7646_s8 + $0x3b8] ss:$28 sps:$4 sm:$0xff]  }
 0x2fa   :  { %2424 = vmatmul.mubr.bf16.vlgmr.msra.gmra.mrb[8].mxu1 %v2133_v7 }
 0x2fb   :  { %3892 = vmatpush1.bf16.msra.mxu1 %v5506_v22  ;;  %v5611_v22 = vld [vmem:[%s7646_s8 + $0x3c0] ss:$28 sps:$4 sm:$0xff]  }
 0x2fc   :  { %3893 = vmatprep.subr.bf16.mxu1 %v5514_v23  ;;  %v5616_v23 = vld [vmem:[%s7646_s8 + $0x3f4] ss:$28 sps:$4 sm:$0xff]  }
 0x2ff   :  { %3894 = vmatpush1.bf16.msra.mxu1 %v5512_v24  ;;  %v5619_v24 = vld [vmem:[%s7646_s8 + $0x3fc] ss:$28 sps:$4 sm:$0xff]  }
 0x300   :  { %3895 = vmatprep.subr.bf16.mxu1 %v5520_v25  ;;  %v5614_v25 = vld [vmem:[%s7646_s8 + $0x3f0] ss:$28 sps:$4 sm:$0xff]  }
 0x303   :  { %3896 = vmatpush1.bf16.msra.mxu1 %v5518_v26  ;;  %v5617_v26 = vld [vmem:[%s7646_s8 + $0x3f8] ss:$28 sps:$4 sm:$0xff]  }
 0x304   :  { %3897 = vmatprep.subr.bf16.mxu1 %v5526_v27  ;;  %v5622_v27 = vld [vmem:[%s7646_s8 + $0x42c] ss:$28 sps:$4 sm:$0xff]  }
 0x307   :  { %3898 = vmatpush1.bf16.msra.mxu1 %v5524_v28  ;;  %v5625_v28 = vld [vmem:[%s7646_s8 + $0x434] ss:$28 sps:$4 sm:$0xff]  }
 0x308   :  { %3899 = vmatprep.subr.bf16.mxu1 %v5532_v29  ;;  %v5620_v29 = vld [vmem:[%s7646_s8 + $0x428] ss:$28 sps:$4 sm:$0xff]  }
 0x30b   :  { %3900 = vmatpush1.bf16.msra.mxu1 %v5530_v30  ;;  %v5623_v30 = vld [vmem:[%s7646_s8 + $0x430] ss:$28 sps:$4 sm:$0xff]  }
 0x30c   :  { %3901 = vmatprep.subr.bf16.mxu1 %v5538_v31  ;;  %v5628_v31 = vld [vmem:[%s7646_s8 + $0x464] ss:$28 sps:$4 sm:$0xff]  }
 0x30f   :  { %3902 = vmatpush1.bf16.msra.mxu1 %v5536_v32  ;;  %v5631_v32 = vld [vmem:[%s7646_s8 + $0x46c] ss:$28 sps:$4 sm:$0xff]  }
 0x310   :  { %3903 = vmatprep.subr.bf16.mxu1 %v5544_v33  ;;  %v5626_v33 = vld [vmem:[%s7646_s8 + $0x460] ss:$28 sps:$4 sm:$0xff]  }
 0x313   :  { %3904 = vmatpush1.bf16.msra.mxu1 %v5542_v34  ;;  %v5629_v34 = vld [vmem:[%s7646_s8 + $0x468] ss:$28 sps:$4 sm:$0xff]  }
 0x314   :  { %3905 = vmatprep.subr.bf16.mxu1 %v5550_v35  ;;  %v5634_v35 = vld [vmem:[%s7646_s8 + $0x49c] ss:$28 sps:$4 sm:$0xff]  }
 0x317   :  { %3906 = vmatpush1.bf16.msra.mxu1 %v5548_v36  ;;  %v5637_v36 = vld [vmem:[%s7646_s8 + $0x4a4] ss:$28 sps:$4 sm:$0xff]  }
 0x318   :  { %3907 = vmatprep.subr.bf16.mxu1 %v5556_v37  ;;  %v5632_v37 = vld [vmem:[%s7646_s8 + $0x498] ss:$28 sps:$4 sm:$0xff]  }
 0x31b   :  { %3908 = vmatpush1.bf16.msra.mxu1 %v5554_v38  ;;  %v5635_v38 = vld [vmem:[%s7646_s8 + $0x4a0] ss:$28 sps:$4 sm:$0xff]  }
 0x31c   :  { %3909 = vmatprep.subr.bf16.mxu1 %v5562_v39  ;;  %v2179_v39 = vrot.slane %v7090_v0, %v6676_v52 }
 0x31f   :  { %3910 = vmatpush1.bf16.msra.mxu1 %v5560_v40  ;;  %v5640_v40 = vld [vmem:[%s7646_s8 + $0x4d4] ss:$28 sps:$4 sm:$0xff]  }
 0x320   :  { %3911 = vmatprep.subr.bf16.mxu1 %v5568_v41  ;;  %v5643_v41 = vld [vmem:[%s7646_s8 + $0x4dc] ss:$28 sps:$4 sm:$0xff]  }
 0x323   :  { %3912 = vmatpush1.bf16.msra.mxu1 %v5566_v42  ;;  %v2183_v42 = vrot.slane %v7090_v0, %v6685_v55  ;;  %v5652_v0 = vld [vmem:[%s7646_s8 + $0x544] ss:$28 sps:$4 sm:$0xff]  }
 0x324   :  { %3913 = vmatprep.subr.bf16.mxu1 %v5574_v43 }
 0x327   :  { %3914 = vmatpush1.bf16.msra.mxu1 %v5572_v44  ;;  %v5638_v44 = vld [vmem:[%s7646_s8 + $0x4d0] ss:$28 sps:$4 sm:$0xff]  }
 0x328   :  { %3915 = vmatprep.subr.bf16.mxu1 %v5580_v45  ;;  %v5641_v45 = vld [vmem:[%s7646_s8 + $0x4d8] ss:$28 sps:$4 sm:$0xff]  }
 0x32b   :  { %3916 = vmatpush1.bf16.msra.mxu1 %v5578_v46 }
 0x32c   :  { %3917 = vmatprep.subr.bf16.mxu1 %v5586_v47 }
 0x32f   :  { %3918 = vmatpush1.bf16.msra.mxu1 %v5584_v48  ;;  %v5646_v48 = vld [vmem:[%s7646_s8 + $0x50c] ss:$28 sps:$4 sm:$0xff]  }
 0x330   :  { %3919 = vmatprep.subr.bf16.mxu1 %v5592_v49  ;;  %v5649_v49 = vld [vmem:[%s7646_s8 + $0x514] ss:$28 sps:$4 sm:$0xff]  }
 0x333   :  { %3920 = vmatpush1.bf16.msra.mxu1 %v5590_v56 }
 0x334   :  { %3921 = vmatprep.subr.bf16.mxu1 %v5598_v58 }
 0x337   :  { %3922 = vmatpush1.bf16.msra.mxu1 %v5596_v60  ;;  %v5644_v60 = vld [vmem:[%s7646_s8 + $0x508] ss:$28 sps:$4 sm:$0xff]  }
 0x338   :  { %3934 = vmatprep.subr.bf16.mxu1 %v5604_v62 }
 0x3ad   :  { %v2382_v3 = vpop.f32.mrb[4].mxu1 }
 0x3ae   :  { %v2383_v4 = vadd.f32 %v2382_v3, %v2171_v1  ;;  %v2384_v5 = vpop.f32.mrb[5].mxu1 }
 0x3af   :  { %v2385_v6 = vadd.f32 %v2384_v5, %v2175_v2  ;;  %v2386_v7 = vpop.f32.mrb[6].mxu1 }
 0x3b0   :  { %v2387_v8 = vadd.f32 %v2386_v7, %v2171_v1  ;;  %v2388_v9 = vpop.f32.mrb[7].mxu1  ;;  %v2434_v12 = vmax.f32 %v2383_v4, 0.0  ;;  %v5655_v1 = vld [vmem:[%s7646_s8 + $0x54c] ss:$28 sps:$4 sm:$0xff]  }
 0x3b1   :  { %v2389_v10 = vadd.f32 %v2388_v9, %v2175_v2  ;;  %v2435_v11 = vmax.f32 %v2385_v6, 0.0  ;;  %v5650_v6 = vld [vmem:[%s7646_s8 + $0x540] ss:$28 sps:$4 sm:$0xff]   ;;  %v5653_v7 = vld [vmem:[%s7646_s8 + $0x548] ss:$28 sps:$4 sm:$0xff]  }
 0x3b2   :  { %v2438_v13 = vmax.f32 %v2387_v8, 0.0  ;;  %v5658_v8 = vld [vmem:[%s7646_s8 + $0x57c] ss:$28 sps:$4 sm:$0xff]   ;;  %v5661_v9 = vld [vmem:[%s7646_s8 + $0x584] ss:$28 sps:$4 sm:$0xff]  }
 0x3b3   :  { %v2439_v14 = vmax.f32 %v2389_v10, 0.0  ;;  %v5656_v10 = vld [vmem:[%s7646_s8 + $0x578] ss:$28 sps:$4 sm:$0xff]  }
 0x3b4   :  { %v7096_v15 = vpack.c.bf16 %v2438_v13, %v2434_v12  ;;  %v5659_v12 = vld [vmem:[%s7646_s8 + $0x580] ss:$28 sps:$4 sm:$0xff]   ;;  %v5664_v13 = vld [vmem:[%s7646_s8 + $0x5b4] ss:$28 sps:$4 sm:$0xff]  }
 0x3b5   :  { %v7098_v16 = vpack.c.bf16 %v2439_v14, %v2435_v11  ;;  %v5667_v11 = vld [vmem:[%s7646_s8 + $0x5bc] ss:$28 sps:$4 sm:$0xff]   ;;  %v5662_v14 = vld [vmem:[%s7646_s8 + $0x5b0] ss:$28 sps:$4 sm:$0xff]  }
 0x3b7   :  { %3923 = vmatprep.mubr.bf16.mxu1 %v7098_v16  ;;  %4009 = vmatprep.mubr.bf16.mxu0 %v7098_v16 }
 0x3b8   :  { %3924 = vmatmul.mubr.bf16.vlgmr.msra.gmra.mrb[12].mxu1 %v7096_v15  ;;  %4010 = vmatmul.mubr.bf16.vlgmr.msra.gmra.mrb[8].mxu0 %v7096_v15 }
 0x3b9   :  { %3935 = vmatpush1.bf16.msra.mxu1 %v5602_v17  ;;  %4021 = vmatpush1.bf16.msra.mxu0 %v5605_v18  ;;  %v5665_v17 = vld [vmem:[%s7646_s8 + $0x5b8] ss:$28 sps:$4 sm:$0xff]   ;;  %v5670_v18 = vld [vmem:[%s7646_s8 + $0x5ec] ss:$28 sps:$4 sm:$0xff]  }
 0x3ba   :  { %3936 = vmatprep.subr.bf16.mxu1 %v5610_v19  ;;  %4022 = vmatprep.subr.bf16.mxu0 %v5613_v20  ;;  %v5673_v19 = vld [vmem:[%s7646_s8 + $0x5f4] ss:$28 sps:$4 sm:$0xff]   ;;  %v5668_v20 = vld [vmem:[%s7646_s8 + $0x5e8] ss:$28 sps:$4 sm:$0xff]  }
 0x3bd   :  { %3937 = vmatpush1.bf16.msra.mxu1 %v5608_v21  ;;  %4023 = vmatpush1.bf16.msra.mxu0 %v5611_v22  ;;  %v5671_v21 = vld [vmem:[%s7646_s8 + $0x5f0] ss:$28 sps:$4 sm:$0xff]   ;;  %v5676_v22 = vld [vmem:[%s7646_s8 + $0x624] ss:$28 sps:$4 sm:$0xff]  }
 0x3be   :  { %3938 = vmatprep.subr.bf16.mxu1 %v5616_v23  ;;  %4024 = vmatprep.subr.bf16.mxu0 %v5619_v24  ;;  %v5679_v23 = vld [vmem:[%s7646_s8 + $0x62c] ss:$28 sps:$4 sm:$0xff]   ;;  %v5674_v24 = vld [vmem:[%s7646_s8 + $0x620] ss:$28 sps:$4 sm:$0xff]  }
 0x3c1   :  { %3939 = vmatpush1.bf16.msra.mxu1 %v5614_v25  ;;  %4025 = vmatpush1.bf16.msra.mxu0 %v5617_v26  ;;  %v5677_v25 = vld [vmem:[%s7646_s8 + $0x628] ss:$28 sps:$4 sm:$0xff]   ;;  %v5682_v26 = vld [vmem:[%s7646_s8 + $0x65c] ss:$28 sps:$4 sm:$0xff]  }
 0x3c2   :  { %3940 = vmatprep.subr.bf16.mxu1 %v5622_v27  ;;  %4026 = vmatprep.subr.bf16.mxu0 %v5625_v28  ;;  %v5685_v27 = vld [vmem:[%s7646_s8 + $0x664] ss:$28 sps:$4 sm:$0xff]   ;;  %v5680_v28 = vld [vmem:[%s7646_s8 + $0x658] ss:$28 sps:$4 sm:$0xff]  }
 0x3c5   :  { %3941 = vmatpush1.bf16.msra.mxu1 %v5620_v29  ;;  %4027 = vmatpush1.bf16.msra.mxu0 %v5623_v30  ;;  %v5683_v29 = vld [vmem:[%s7646_s8 + $0x660] ss:$28 sps:$4 sm:$0xff]   ;;  %v5688_v30 = vld [vmem:[%s7646_s8 + $0x694] ss:$28 sps:$4 sm:$0xff]  }
 0x3c6   :  { %3942 = vmatprep.subr.bf16.mxu1 %v5628_v31  ;;  %4028 = vmatprep.subr.bf16.mxu0 %v5631_v32  ;;  %v5691_v31 = vld [vmem:[%s7646_s8 + $0x69c] ss:$28 sps:$4 sm:$0xff]   ;;  %v5686_v32 = vld [vmem:[%s7646_s8 + $0x690] ss:$28 sps:$4 sm:$0xff]  }
 0x3c9   :  { %3943 = vmatpush1.bf16.msra.mxu1 %v5626_v33  ;;  %4029 = vmatpush1.bf16.msra.mxu0 %v5629_v34  ;;  %v5689_v33 = vld [vmem:[%s7646_s8 + $0x698] ss:$28 sps:$4 sm:$0xff]   ;;  %v5694_v34 = vld [vmem:[%s7646_s8 + $0x6cc] ss:$28 sps:$4 sm:$0xff]  }
 0x3ca   :  { %3944 = vmatprep.subr.bf16.mxu1 %v5634_v35  ;;  %4030 = vmatprep.subr.bf16.mxu0 %v5637_v36  ;;  %v5697_v35 = vld [vmem:[%s7646_s8 + $0x6d4] ss:$28 sps:$4 sm:$0xff]   ;;  %v5692_v36 = vld [vmem:[%s7646_s8 + $0x6c8] ss:$28 sps:$4 sm:$0xff]  }
 0x3cd   :  { %v2425_v43 = vpop.f32.mrb[8].mxu1  ;;  %3945 = vmatpush1.bf16.msra.mxu1 %v5632_v37  ;;  %4031 = vmatpush1.bf16.msra.mxu0 %v5635_v38  ;;  %v5695_v37 = vld [vmem:[%s7646_s8 + $0x6d0] ss:$28 sps:$4 sm:$0xff]  }
 0x3ce   :  { %v2426_v46 = vadd.f32 %v2425_v43, %v2179_v39  ;;  %v2427_v47 = vpop.f32.mrb[9].mxu1  ;;  %3946 = vmatprep.subr.bf16.mxu1 %v5640_v40  ;;  %4032 = vmatprep.subr.bf16.mxu0 %v5643_v41  ;;  %v5700_v38 = vld [vmem:[%s7646_s8 + $0x14] ss:$28 sps:$4 sm:$0xff]  }
 0x3cf   :  { %v2428_v53 = vadd.f32 %v2427_v47, %v2183_v42  ;;  %v2429_v56 = vpop.f32.mrb[10].mxu1  ;;  %v5698_v40 = vld [vmem:[%s7646_s8 + $0x10] ss:$28 sps:$4 sm:$0xff]   ;;  %v5702_v41 = vld [vmem:[%s7646_s8 + $0x18] ss:$28 sps:$4 sm:$0xff]  }
 0x3d0   :  { %v2430_v57 = vadd.f32 %v2429_v56, %v2179_v39  ;;  %v2431_v58 = vpop.f32.mrb[11].mxu1  ;;  %v2436_v62 = vmax.f32 %v2426_v46, 0.0  ;;  %v5701_v39 = vld [vmem:[%s7646_s8 + $0x1d8] ss:$28 sps:$4 sm:$0xff]   ;;  %v5706_v43 = vld [vmem:[%s7646_s8 + $0x210] ss:$28 sps:$4 sm:$0xff]  }
 0x3d1   :  { %v2432_v59 = vadd.f32 %v2431_v58, %v2183_v42  ;;  %3947 = vmatpush1.bf16.msra.mxu1 %v5638_v44  ;;  %4033 = vmatpush1.bf16.msra.mxu0 %v5641_v45  ;;  %v2437_v2 = vmax.f32 %v2428_v53, 0.0  ;;  %v5705_v42 = vld [vmem:[%s7646_s8 + $0x4c] ss:$28 sps:$4 sm:$0xff]   ;;  %v5710_v46 = vld [vmem:[%s7646_s8 + $0x84] ss:$28 sps:$4 sm:$0xff]  }
 0x3d2   :  { %v2440_v63 = vmax.f32 %v2430_v57, 0.0  ;;  %3948 = vmatprep.subr.bf16.mxu1 %v5646_v48  ;;  %4034 = vmatprep.subr.bf16.mxu0 %v5649_v49  ;;  %v5703_v44 = vld [vmem:[%s7646_s8 + $0x48] ss:$28 sps:$4 sm:$0xff]   ;;  %v5707_v45 = vld [vmem:[%s7646_s8 + $0x50] ss:$28 sps:$4 sm:$0xff]  }
 0x3d3   :  { %v2441_v3 = vmax.f32 %v2432_v59, 0.0  ;;  %v5711_v47 = vld [vmem:[%s7646_s8 + $0x248] ss:$28 sps:$4 sm:$0xff]   ;;  %v5708_v48 = vld [vmem:[%s7646_s8 + $0x80] ss:$28 sps:$4 sm:$0xff]  }
 0x3d4   :  { %v7204_v4 = vpack.c.bf16 %v2440_v63, %v2436_v62  ;;  %v5715_v49 = vld [vmem:[%s7646_s8 + $0xbc] ss:$28 sps:$4 sm:$0xff]   ;;  %v5720_v58 = vld [vmem:[%s7646_s8 + $0xf4] ss:$28 sps:$4 sm:$0xff]   ;;  %v5725_v62 = vld [vmem:[%s7646_s8 + $0x12c] ss:$28 sps:$4 sm:$0xff]  }
 0x3d5   :  { %v7206_v5 = vpack.c.bf16 %v2441_v3, %v2437_v2  ;;  %3949 = vmatpush1.bf16.msra.mxu1 %v5644_v60  ;;  %4035 = vmatpush1.bf16.msra.mxu0 %v5647_v61  ;;  %v5716_v53 = vld [vmem:[%s7646_s8 + $0x280] ss:$28 sps:$4 sm:$0xff]   ;;  %v5713_v56 = vld [vmem:[%s7646_s8 + $0xb8] ss:$28 sps:$4 sm:$0xff]   ;;  %v5718_v60 = vld [vmem:[%s7646_s8 + $0xf0] ss:$28 sps:$4 sm:$0xff]  }
 0x3d6   :  { %3950 = vmatprep.subr.bf16.mxu1 %v5652_v0  ;;  %4036 = vmatprep.subr.bf16.mxu0 %v5655_v1  ;;  %v5717_v57 = vld [vmem:[%s7646_s8 + $0xc0] ss:$28 sps:$4 sm:$0xff]   ;;  %v5721_v59 = vld [vmem:[%s7646_s8 + $0x2b8] ss:$28 sps:$4 sm:$0xff]   ;;  %v5726_v63 = vld [vmem:[%s7646_s8 + $0x2f0] ss:$28 sps:$4 sm:$0xff]  }
 0x3d7   :  { %3966 = vmatprep.mubr.bf16.mxu1 %v7206_v5  ;;  %4052 = vmatprep.mubr.bf16.mxu0 %v7206_v5  ;;  %v5722_v61 = vld [vmem:[%s7646_s8 + $0xf8] ss:$28 sps:$4 sm:$0xff]   ;;  %v5723_v0 = vld [vmem:[%s7646_s8 + $0x128] ss:$28 sps:$4 sm:$0xff]   ;;  %v5727_v1 = vld [vmem:[%s7646_s8 + $0x130] ss:$28 sps:$4 sm:$0xff]  }
 0x3d8   :  { %v5730_v2 = vld [vmem:[%s7646_s8 + $0x164] ss:$28 sps:$4 sm:$0xff]  }
 0x3d9   :  { %3951 = vmatpush1.bf16.msra.mxu1 %v5650_v6  ;;  %4037 = vmatpush1.bf16.msra.mxu0 %v5653_v7  ;;  %v5731_v3 = vld [vmem:[%s7646_s8 + $0x328] ss:$28 sps:$4 sm:$0xff]   ;;  %v5728_v6 = vld [vmem:[%s7646_s8 + $0x160] ss:$28 sps:$4 sm:$0xff]  }
 0x3da   :  { %3952 = vmatprep.subr.bf16.mxu1 %v5658_v8  ;;  %4038 = vmatprep.subr.bf16.mxu0 %v5661_v9  ;;  %v5732_v7 = vld [vmem:[%s7646_s8 + $0x168] ss:$28 sps:$4 sm:$0xff]   ;;  %v5735_v8 = vld [vmem:[%s7646_s8 + $0x19c] ss:$28 sps:$4 sm:$0xff]  }
 0x3db   :  { %v5736_v9 = vld [vmem:[%s7646_s8 + $0x360] ss:$28 sps:$4 sm:$0xff]  }
 0x3dd   :  { %3953 = vmatpush1.bf16.msra.mxu1 %v5656_v10  ;;  %4039 = vmatpush1.bf16.msra.mxu0 %v5659_v12  ;;  %v5733_v10 = vld [vmem:[%s7646_s8 + $0x198] ss:$28 sps:$4 sm:$0xff]   ;;  %v5737_v12 = vld [vmem:[%s7646_s8 + $0x1a0] ss:$28 sps:$4 sm:$0xff]  }
 0x3de   :  { %3954 = vmatprep.subr.bf16.mxu1 %v5664_v13  ;;  %4040 = vmatprep.subr.bf16.mxu0 %v5667_v11  ;;  %v5740_v13 = vld [vmem:[%s7646_s8 + $0x1d4] ss:$28 sps:$4 sm:$0xff]  }
 0x3df   :  { %v5741_v11 = vld [vmem:[%s7646_s8 + $0x558] ss:$28 sps:$4 sm:$0xff]  }
 0x3e1   :  { %3955 = vmatpush1.bf16.msra.mxu1 %v5662_v14  ;;  %4041 = vmatpush1.bf16.msra.mxu0 %v5665_v17  ;;  %v5738_v14 = vld [vmem:[%s7646_s8 + $0x1d0] ss:$28 sps:$4 sm:$0xff]   ;;  %v5742_v17 = vld [vmem:[%s7646_s8 + $0x398] ss:$28 sps:$4 sm:$0xff]  }
 0x3e2   :  { %3956 = vmatprep.subr.bf16.mxu1 %v5670_v18  ;;  %4042 = vmatprep.subr.bf16.mxu0 %v5673_v19  ;;  %v5745_v18 = vld [vmem:[%s7646_s8 + $0x20c] ss:$28 sps:$4 sm:$0xff]  }
 0x3e3   :  { %v5746_v19 = vld [vmem:[%s7646_s8 + $0x590] ss:$28 sps:$4 sm:$0xff]  }
 0x3e5   :  { %3957 = vmatpush1.bf16.msra.mxu1 %v5668_v20  ;;  %4043 = vmatpush1.bf16.msra.mxu0 %v5671_v21  ;;  %v5743_v20 = vld [vmem:[%s7646_s8 + $0x208] ss:$28 sps:$4 sm:$0xff]   ;;  %v5747_v21 = vld [vmem:[%s7646_s8 + $0x3d0] ss:$28 sps:$4 sm:$0xff]  }
 0x3e6   :  { %3958 = vmatprep.subr.bf16.mxu1 %v5676_v22  ;;  %4044 = vmatprep.subr.bf16.mxu0 %v5679_v23  ;;  %v5750_v22 = vld [vmem:[%s7646_s8 + $0x244] ss:$28 sps:$4 sm:$0xff]  }
 0x3e7   :  { %v5751_v23 = vld [vmem:[%s7646_s8 + $0x5c8] ss:$28 sps:$4 sm:$0xff]  }
 0x3e9   :  { %3959 = vmatpush1.bf16.msra.mxu1 %v5674_v24  ;;  %4045 = vmatpush1.bf16.msra.mxu0 %v5677_v25  ;;  %v5748_v24 = vld [vmem:[%s7646_s8 + $0x240] ss:$28 sps:$4 sm:$0xff]   ;;  %v5752_v25 = vld [vmem:[%s7646_s8 + $0x408] ss:$28 sps:$4 sm:$0xff]  }
 0x3ea   :  { %3960 = vmatprep.subr.bf16.mxu1 %v5682_v26  ;;  %4046 = vmatprep.subr.bf16.mxu0 %v5685_v27  ;;  %v5755_v26 = vld [vmem:[%s7646_s8 + $0x27c] ss:$28 sps:$4 sm:$0xff]  }
 0x3eb   :  { %v5756_v27 = vld [vmem:[%s7646_s8 + $0x600] ss:$28 sps:$4 sm:$0xff]  }
 0x3ed   :  { %3961 = vmatpush1.bf16.msra.mxu1 %v5680_v28  ;;  %4047 = vmatpush1.bf16.msra.mxu0 %v5683_v29  ;;  %v5753_v28 = vld [vmem:[%s7646_s8 + $0x278] ss:$28 sps:$4 sm:$0xff]   ;;  %v5757_v29 = vld [vmem:[%s7646_s8 + $0x440] ss:$28 sps:$4 sm:$0xff]  }
 0x3ee   :  { %3962 = vmatprep.subr.bf16.mxu1 %v5688_v30  ;;  %4048 = vmatprep.subr.bf16.mxu0 %v5691_v31  ;;  %v5760_v30 = vld [vmem:[%s7646_s8 + $0x2b4] ss:$28 sps:$4 sm:$0xff]  }
 0x3ef   :  { %v5761_v31 = vld [vmem:[%s7646_s8 + $0x638] ss:$28 sps:$4 sm:$0xff]  }
 0x3f1   :  { %3963 = vmatpush1.bf16.msra.mxu1 %v5686_v32  ;;  %4049 = vmatpush1.bf16.msra.mxu0 %v5689_v33  ;;  %v5758_v32 = vld [vmem:[%s7646_s8 + $0x2b0] ss:$28 sps:$4 sm:$0xff]   ;;  %v5762_v33 = vld [vmem:[%s7646_s8 + $0x478] ss:$28 sps:$4 sm:$0xff]  }
 0x3f2   :  { %3964 = vmatprep.subr.bf16.mxu1 %v5694_v34  ;;  %4050 = vmatprep.subr.bf16.mxu0 %v5697_v35  ;;  %v5765_v34 = vld [vmem:[%s7646_s8 + $0x2ec] ss:$28 sps:$4 sm:$0xff]  }
 0x3f3   :  { %v5766_v35 = vld [vmem:[%s7646_s8 + $0x670] ss:$28 sps:$4 sm:$0xff]  }
 0x3f5   :  { %3965 = vmatpush1.bf16.msra.mxu1 %v5692_v36  ;;  %4051 = vmatpush1.bf16.msra.mxu0 %v5695_v37  ;;  %v5763_v36 = vld [vmem:[%s7646_s8 + $0x2e8] ss:$28 sps:$4 sm:$0xff]   ;;  %v5767_v37 = vld [vmem:[%s7646_s8 + $0x4b0] ss:$28 sps:$4 sm:$0xff]  }
 0x3f6   :  { %4063 = vmatprep.subr.bf16.mxu1 %v5700_v38  ;;  %4949 = vmatprep.subr.bf16.mxu0 %v5701_v39  ;;  %v5770_v38 = vld [vmem:[%s7646_s8 + $0x324] ss:$28 sps:$4 sm:$0xff]  }
 0x3f7   :  { %v5771_v39 = vld [vmem:[%s7646_s8 + $0x6a8] ss:$28 sps:$4 sm:$0xff]  }
 0x3f8   :  { %3967 = vmatmul.mubr.bf16.vlgmr.msra.gmra.mrb[12].mxu1 %v7204_v4  ;;  %4053 = vmatmul.mubr.bf16.vlgmr.msra.gmra.mrb[8].mxu0 %v7204_v4 }
 0x3f9   :  { %4064 = vmatpush1.bf16.msra.mxu1 %v5698_v40  ;;  %4095 = vmatprep.mubr.bf16.mxu1 %v7098_v16  ;;  %v5768_v40 = vld [vmem:[%s7646_s8 + $0x320] ss:$28 sps:$4 sm:$0xff]  }
 0x3fa   :  { %4950 = vmatpush3.bf16.msra.mxu0 %v5702_v41  ;;  %4181 = vmatprep.mubr.bf16.mxu0 %v7098_v16  ;;  %v5712_v16 = vld [vmem:[%s7646_s8 + $0x88] ss:$28 sps:$4 sm:$0xff]  }
 0x3fb   :  { %4065 = vmatprep.subr.bf16.mxu1 %v5705_v42  ;;  %4951 = vmatprep.subr.bf16.mxu0 %v5706_v43  ;;  %v5772_v41 = vld [vmem:[%s7646_s8 + $0x4e8] ss:$28 sps:$4 sm:$0xff]   ;;  %v5775_v42 = vld [vmem:[%s7646_s8 + $0x35c] ss:$28 sps:$4 sm:$0xff]  }
 0x3fc   :  { %v5776_v43 = vld [vmem:[%s7646_s8 + $0x6e0] ss:$28 sps:$4 sm:$0xff]  }
 0x3fd   :  { %4066 = vmatpush1.bf16.msra.mxu1 %v5703_v44  ;;  %v5773_v44 = vld [vmem:[%s7646_s8 + $0x358] ss:$28 sps:$4 sm:$0xff]  }
 0x3fe   :  { %4952 = vmatpush3.bf16.msra.mxu0 %v5707_v45  ;;  %4067 = vmatprep.subr.bf16.mxu1 %v5710_v46  ;;  %v5777_v45 = vld [vmem:[%s7646_s8 + $0x520] ss:$28 sps:$4 sm:$0xff]   ;;  %v5780_v46 = vld [vmem:[%s7646_s8 + $0x394] ss:$28 sps:$4 sm:$0xff]  }
 0x3ff   :  { %4953 = vmatprep.subr.bf16.mxu0 %v5711_v47  ;;  %v5778_v47 = vld [vmem:[%s7646_s8 + $0x390] ss:$28 sps:$4 sm:$0xff]  }
 0x401   :  { %4068 = vmatpush1.bf16.msra.mxu1 %v5708_v48  ;;  %v5783_v48 = vld [vmem:[%s7646_s8 + $0x3cc] ss:$28 sps:$4 sm:$0xff]  }
 0x402   :  { %4954 = vmatpush3.bf16.msra.mxu0 %v5712_v16  ;;  %4069 = vmatprep.subr.bf16.mxu1 %v5715_v49  ;;  %v5781_v16 = vld [vmem:[%s7646_s8 + $0x3c8] ss:$28 sps:$4 sm:$0xff]  }
 0x403   :  { %4955 = vmatprep.subr.bf16.mxu0 %v5716_v53  ;;  %v5786_v49 = vld [vmem:[%s7646_s8 + $0x404] ss:$28 sps:$4 sm:$0xff]  }
 0x404   :  { %v5784_v53 = vld [vmem:[%s7646_s8 + $0x400] ss:$28 sps:$4 sm:$0xff]  }
 0x405   :  { %4070 = vmatpush1.bf16.msra.mxu1 %v5713_v56  ;;  %v5792_v56 = vld [vmem:[%s7646_s8 + $0x474] ss:$28 sps:$4 sm:$0xff]  }
 0x406   :  { %4956 = vmatpush3.bf16.msra.mxu0 %v5717_v57  ;;  %4071 = vmatprep.subr.bf16.mxu1 %v5720_v58  ;;  %v5790_v57 = vld [vmem:[%s7646_s8 + $0x470] ss:$28 sps:$4 sm:$0xff]  }
 0x407   :  { %4957 = vmatprep.subr.bf16.mxu0 %v5721_v59  ;;  %v5795_v58 = vld [vmem:[%s7646_s8 + $0x4ac] ss:$28 sps:$4 sm:$0xff]  }
 0x408   :  { %v5793_v59 = vld [vmem:[%s7646_s8 + $0x4a8] ss:$28 sps:$4 sm:$0xff]  }
 0x409   :  { %4072 = vmatpush1.bf16.msra.mxu1 %v5718_v60  ;;  %v5798_v60 = vld [vmem:[%s7646_s8 + $0x4e4] ss:$28 sps:$4 sm:$0xff]  }
 0x40a   :  { %4958 = vmatpush3.bf16.msra.mxu0 %v5722_v61  ;;  %4073 = vmatprep.subr.bf16.mxu1 %v5725_v62  ;;  %v5796_v61 = vld [vmem:[%s7646_s8 + $0x4e0] ss:$28 sps:$4 sm:$0xff]  }
 0x40b   :  { %4959 = vmatprep.subr.bf16.mxu0 %v5726_v63  ;;  %v5801_v62 = vld [vmem:[%s7646_s8 + $0x51c] ss:$28 sps:$4 sm:$0xff]  }
 0x40c   :  { %v5799_v63 = vld [vmem:[%s7646_s8 + $0x518] ss:$28 sps:$4 sm:$0xff]  }
 0x40d   :  { %4074 = vmatpush1.bf16.msra.mxu1 %v5723_v0  ;;  %v5804_v0 = vld [vmem:[%s7646_s8 + $0x554] ss:$28 sps:$4 sm:$0xff]  }
 0x40e   :  { %4960 = vmatpush3.bf16.msra.mxu0 %v5727_v1  ;;  %4075 = vmatprep.subr.bf16.mxu1 %v5730_v2  ;;  %v5802_v1 = vld [vmem:[%s7646_s8 + $0x550] ss:$28 sps:$4 sm:$0xff]  }
 0x40f   :  { %4961 = vmatprep.subr.bf16.mxu0 %v5731_v3  ;;  %v5807_v2 = vld [vmem:[%s7646_s8 + $0x58c] ss:$28 sps:$4 sm:$0xff]  }
 0x410   :  { %v5805_v3 = vld [vmem:[%s7646_s8 + $0x588] ss:$28 sps:$4 sm:$0xff]  }
 0x411   :  { %4076 = vmatpush1.bf16.msra.mxu1 %v5728_v6  ;;  %v5810_v6 = vld [vmem:[%s7646_s8 + $0x5c4] ss:$28 sps:$4 sm:$0xff]  }
 0x412   :  { %4962 = vmatpush3.bf16.msra.mxu0 %v5732_v7  ;;  %4077 = vmatprep.subr.bf16.mxu1 %v5735_v8  ;;  %v5808_v7 = vld [vmem:[%s7646_s8 + $0x5c0] ss:$28 sps:$4 sm:$0xff]  }
 0x413   :  { %4963 = vmatprep.subr.bf16.mxu0 %v5736_v9  ;;  %v5813_v8 = vld [vmem:[%s7646_s8 + $0x5fc] ss:$28 sps:$4 sm:$0xff]  }
 0x414   :  { %v5811_v9 = vld [vmem:[%s7646_s8 + $0x5f8] ss:$28 sps:$4 sm:$0xff]  }
 0x415   :  { %4078 = vmatpush1.bf16.msra.mxu1 %v5733_v10  ;;  %v5816_v10 = vld [vmem:[%s7646_s8 + $0x634] ss:$28 sps:$4 sm:$0xff]  }
 0x416   :  { %4964 = vmatpush3.bf16.msra.mxu0 %v5737_v12  ;;  %4079 = vmatprep.subr.bf16.mxu1 %v5740_v13  ;;  %v5814_v12 = vld [vmem:[%s7646_s8 + $0x630] ss:$28 sps:$4 sm:$0xff]  }
 0x417   :  { %4971 = vmatprep.subr.bf16.mxu0 %v5741_v11  ;;  %v5819_v13 = vld [vmem:[%s7646_s8 + $0x66c] ss:$28 sps:$4 sm:$0xff]  }
 0x418   :  { %v5817_v11 = vld [vmem:[%s7646_s8 + $0x668] ss:$28 sps:$4 sm:$0xff]  }
 0x419   :  { %4182 = vmatmul.mubr.bf16.vlgmr.msra.gmra.mrb[12].mxu0 %v7096_v15  ;;  %4080 = vmatpush1.bf16.msra.mxu1 %v5738_v14  ;;  %v5822_v14 = vld [vmem:[%s7646_s8 + $0x6a4] ss:$28 sps:$4 sm:$0xff]  }
 0x41a   :  { %4972 = vmatpush3.bf16.msra.mxu0 %v5742_v17  ;;  %4222 = vmatprep.mubr.bf16.mxu0 %v7206_v5  ;;  %v5820_v17 = vld [vmem:[%s7646_s8 + $0x6a0] ss:$28 sps:$4 sm:$0xff]  }
 0x41b   :  { %4081 = vmatprep.subr.bf16.mxu1 %v5745_v18  ;;  %4973 = vmatprep.subr.bf16.mxu0 %v5746_v19  ;;  %v5825_v18 = vld [vmem:[%s7646_s8 + $0x6dc] ss:$28 sps:$4 sm:$0xff]  }
 0x41c   :  { %v5823_v19 = vld [vmem:[%s7646_s8 + $0x6d8] ss:$28 sps:$4 sm:$0xff]  }
 0x41d   :  { %4082 = vmatpush1.bf16.msra.mxu1 %v5743_v20  ;;  %v7601_v20 = vld [vmem:[%s7651_s9] sm:$0x7f] }
 0x41e   :  { %4974 = vmatpush3.bf16.msra.mxu0 %v5747_v21  ;;  %4083 = vmatprep.subr.bf16.mxu1 %v5750_v22  ;;  %v2707_v21 = vrot.slane %v7601_v20, %v6673_v51  ;;  %v2715_v22 = vrot.slane %v7601_v20, %v6676_v52 }
 0x41f   :  { %4975 = vmatprep.subr.bf16.mxu0 %v5751_v23  ;;  %v2711_v23 = vrot.slane %v7601_v20, %v6682_v54 }
 0x421   :  { %4084 = vmatpush1.bf16.msra.mxu1 %v5748_v24  ;;  %v2719_v24 = vrot.slane %v7601_v20, %v6685_v55 }
 0x422   :  { %4976 = vmatpush3.bf16.msra.mxu0 %v5752_v25  ;;  %4085 = vmatprep.subr.bf16.mxu1 %v5755_v26 }
 0x423   :  { %4977 = vmatprep.subr.bf16.mxu0 %v5756_v27 }
 0x425   :  { %4086 = vmatpush1.bf16.msra.mxu1 %v5753_v28 }
 0x426   :  { %4978 = vmatpush3.bf16.msra.mxu0 %v5757_v29  ;;  %4087 = vmatprep.subr.bf16.mxu1 %v5760_v30 }
 0x427   :  { %4979 = vmatprep.subr.bf16.mxu0 %v5761_v31 }
 0x429   :  { %4088 = vmatpush1.bf16.msra.mxu1 %v5758_v32 }
 0x42a   :  { %4980 = vmatpush3.bf16.msra.mxu0 %v5762_v33  ;;  %4089 = vmatprep.subr.bf16.mxu1 %v5765_v34 }
 0x42b   :  { %4981 = vmatprep.subr.bf16.mxu0 %v5766_v35 }
 0x42d   :  { %4090 = vmatpush1.bf16.msra.mxu1 %v5763_v36 }
 0x42e   :  { %4982 = vmatpush3.bf16.msra.mxu0 %v5767_v37  ;;  %4091 = vmatprep.subr.bf16.mxu1 %v5770_v38 }
 0x42f   :  { %4983 = vmatprep.subr.bf16.mxu0 %v5771_v39 }
 0x431   :  { %4092 = vmatpush1.bf16.msra.mxu1 %v5768_v40 }
 0x432   :  { %4984 = vmatpush3.bf16.msra.mxu0 %v5772_v41  ;;  %4093 = vmatprep.subr.bf16.mxu1 %v5775_v42 }
 0x433   :  { %4985 = vmatprep.subr.bf16.mxu0 %v5776_v43 }
 0x435   :  { %4094 = vmatpush1.bf16.msra.mxu1 %v5773_v44 }
 0x436   :  { %4986 = vmatpush3.bf16.msra.mxu0 %v5777_v45  ;;  %4106 = vmatprep.subr.bf16.mxu1 %v5780_v46 }
 0x438   :  { %4096 = vmatmul.mubr.bf16.vlgmr.msra.gmra.mrb[16].mxu1 %v7096_v15  ;;  %v5789_v15 = vld [vmem:[%s7646_s8 + $0x43c] ss:$28 sps:$4 sm:$0xff]  }
 0x439   :  { %4223 = vmatmul.mubr.bf16.vlgmr.msra.gmra.mrb[16].mxu0 %v7204_v4  ;;  %4107 = vmatpush1.bf16.msra.mxu1 %v5778_v47 }
 0x43a   :  { %4138 = vmatprep.mubr.bf16.mxu1 %v7206_v5  ;;  %4108 = vmatprep.subr.bf16.mxu1 %v5783_v48  ;;  %v5787_v5 = vld [vmem:[%s7646_s8 + $0x438] ss:$28 sps:$4 sm:$0xff]  }
 0x43d   :  { %4109 = vmatpush1.bf16.msra.mxu1 %v5781_v16 }
 0x43e   :  { %4110 = vmatprep.subr.bf16.mxu1 %v5786_v49 }
 0x441   :  { %4111 = vmatpush1.bf16.msra.mxu1 %v5784_v53 }
 0x442   :  { %4112 = vmatprep.subr.bf16.mxu1 %v5789_v15 }
 0x445   :  { %4113 = vmatpush1.bf16.msra.mxu1 %v5787_v5 }
 0x446   :  { %4114 = vmatprep.subr.bf16.mxu1 %v5792_v56 }
 0x449   :  { %4115 = vmatpush1.bf16.msra.mxu1 %v5790_v57 }
 0x44a   :  { %4116 = vmatprep.subr.bf16.mxu1 %v5795_v58 }
 0x44d   :  { %4117 = vmatpush1.bf16.msra.mxu1 %v5793_v59 }
 0x44e   :  { %4118 = vmatprep.subr.bf16.mxu1 %v5798_v60 }
 0x451   :  { %4119 = vmatpush1.bf16.msra.mxu1 %v5796_v61 }
 0x452   :  { %4120 = vmatprep.subr.bf16.mxu1 %v5801_v62 }
 0x455   :  { %4121 = vmatpush1.bf16.msra.mxu1 %v5799_v63 }
 0x456   :  { %4122 = vmatprep.subr.bf16.mxu1 %v5804_v0 }
 0x459   :  { %4123 = vmatpush1.bf16.msra.mxu1 %v5802_v1 }
 0x45a   :  { %4124 = vmatprep.subr.bf16.mxu1 %v5807_v2 }
 0x45d   :  { %4125 = vmatpush1.bf16.msra.mxu1 %v5805_v3 }
 0x45e   :  { %4126 = vmatprep.subr.bf16.mxu1 %v5810_v6 }
 0x461   :  { %4127 = vmatpush1.bf16.msra.mxu1 %v5808_v7 }
 0x462   :  { %4128 = vmatprep.subr.bf16.mxu1 %v5813_v8 }
 0x465   :  { %4129 = vmatpush1.bf16.msra.mxu1 %v5811_v9 }
 0x466   :  { %4130 = vmatprep.subr.bf16.mxu1 %v5816_v10 }
 0x469   :  { %4131 = vmatpush1.bf16.msra.mxu1 %v5814_v12 }
 0x46a   :  { %4132 = vmatprep.subr.bf16.mxu1 %v5819_v13 }
 0x46d   :  { %4133 = vmatpush1.bf16.msra.mxu1 %v5817_v11 }
 0x46e   :  { %4134 = vmatprep.subr.bf16.mxu1 %v5822_v14 }
 0x471   :  { %4135 = vmatpush1.bf16.msra.mxu1 %v5820_v17 }
 0x472   :  { %4136 = vmatprep.subr.bf16.mxu1 %v5825_v18 }
 0x475   :  { %4137 = vmatpush1.bf16.msra.mxu1 %v5823_v19 }
 0x478   :  { %4139 = vmatmul.mubr.bf16.vlgmr.msra.gmra.mrb[16].mxu1 %v7204_v4 }
 0x4cb   :  { %v3968_v25 = vpop.f32.mrb[12].mxu1  ;;  %v4054_v26 = vpop.f32.mrb[8].mxu0 }
 0x4cc   :  { %v5005_v4 = vadd.f32 %v3968_v25, %v2707_v21  ;;  %v5009_v27 = vadd.f32 %v4054_v26, %v2715_v22  ;;  %v3970_v28 = vpop.f32.mrb[13].mxu1  ;;  %v4056_v29 = vpop.f32.mrb[9].mxu0 }
 0x4cd   :  { %v5006_v30 = vadd.f32 %v3970_v28, %v2711_v23  ;;  %v5010_v31 = vadd.f32 %v4056_v29, %v2719_v24  ;;  %v3972_v32 = vpop.f32.mrb[14].mxu1  ;;  %v4058_v33 = vpop.f32.mrb[10].mxu0 }
 0x4ce   :  { %v4915_v51 = vmul.f32 -1.442695, %v5005_v4  ;;  %v4917_v34 = vmul.f32 -1.442695, %v5009_v27  ;;  %v5007_v35 = vadd.f32 %v3972_v32, %v2707_v21  ;;  %v5011_v52 = vadd.f32 %v4058_v33, %v2715_v22  ;;  %v3974_v36 = vpop.f32.mrb[15].mxu1  ;;  %v4060_v37 = vpop.f32.mrb[11].mxu0 }
 0x4cf   :  { %v4916_v54 = vmul.f32 -1.442695, %v5006_v30  ;;  %v4918_v38 = vmul.f32 -1.442695, %v5010_v31  ;;  %v5008_v39 = vadd.f32 %v3974_v36, %v2711_v23  ;;  %v5012_v55 = vadd.f32 %v4060_v37, %v2719_v24 }
 0x4d0   :  { %5830 = vpow2.f32 %v4915_v51  ;;  %v4922_v40 = vmul.f32 -1.442695, %v5007_v35  ;;  %v4924_v41 = vmul.f32 -1.442695, %v5011_v52  ;;  %v2730_v21 = vsub.s32 6, %v6670_v50 }
 0x4d1   :  { %5832 = vpow2.f32 %v4917_v34  ;;  %v4923_v42 = vmul.f32 -1.442695, %v5008_v39  ;;  %v4925_v43 = vmul.f32 -1.442695, %v5012_v55  ;;  %v2722_v39 = vsub.s32 4, %v6670_v50 }
 0x4d2   :  { %5834 = vpow2.f32 %v4916_v54  ;;  %v2731_v22 = vrot.slane %v7601_v20, %v2730_v21  ;;  %v2726_v55 = vsub.s32 5, %v6670_v50 }
 0x4d3   :  { %5836 = vpow2.f32 %v4918_v38 }
 0x4d4   :  { %5838 = vpow2.f32 %v4922_v40  ;;  %v2723_v40 = vrot.slane %v7601_v20, %v2722_v39 }
 0x4d5   :  { %5840 = vpow2.f32 %v4924_v41  ;;  %v2727_v41 = vrot.slane %v7601_v20, %v2726_v55 }
 0x4d6   :  { %5842 = vpow2.f32 %v4923_v42 }
 0x4d7   :  { %5844 = vpow2.f32 %v4925_v43 }
 0x4da   :  { %v5831_v44 = vpop.eup %5830 }
 0x4db   :  { %v5833_v45 = vpop.eup %5832  ;;  %v4273_v46 = vadd.f32 1.0, %v5831_v44 }
 0x4dc   :  { %v5835_v47 = vpop.eup %5834  ;;  %v4275_v48 = vadd.f32 1.0, %v5833_v45 }
 0x4dd   :  { %v5837_v16 = vpop.eup %5836  ;;  %5846 = vrcp.f32 %v4273_v46  ;;  %v4274_v49 = vadd.f32 1.0, %v5835_v47 }
 0x4de   :  { %v5839_v53 = vpop.eup %5838  ;;  %5848 = vrcp.f32 %v4275_v48  ;;  %v4276_v15 = vadd.f32 1.0, %v5837_v16 }
 0x4df   :  { %v5841_v5 = vpop.eup %5840  ;;  %5850 = vrcp.f32 %v4274_v49  ;;  %v4280_v56 = vadd.f32 1.0, %v5839_v53 }
 0x4e0   :  { %v5843_v57 = vpop.eup %5842  ;;  %5852 = vrcp.f32 %v4276_v15  ;;  %v4282_v58 = vadd.f32 1.0, %v5841_v5 }
 0x4e1   :  { %v5845_v59 = vpop.eup %5844  ;;  %5854 = vrcp.f32 %v4280_v56  ;;  %v4281_v60 = vadd.f32 1.0, %v5843_v57 }
 0x4e2   :  { %5856 = vrcp.f32 %v4282_v58  ;;  %v4283_v61 = vadd.f32 1.0, %v5845_v59 }
 0x4e3   :  { %5858 = vrcp.f32 %v4281_v60 }
 0x4e4   :  { %5860 = vrcp.f32 %v4283_v61 }
 0x4e7   :  { %v5847_v62 = vpop.eup %5846 }
 0x4e8   :  { %v5849_v63 = vpop.eup %5848 }
 0x4e9   :  { %v5851_v0 = vpop.eup %5850 }
 0x4ea   :  { %v5853_v1 = vpop.eup %5852  ;;  %v4939_v2 = vpack.c.bf16 %v5851_v0, %v5847_v62 }
 0x4eb   :  { %v5855_v3 = vpop.eup %5854  ;;  %v4940_v6 = vpack.c.bf16 %v5853_v1, %v5849_v63 }
 0x4ec   :  { %v5857_v7 = vpop.eup %5856  ;;  %4359 = vst [vmem:[%s7652_s10] sm:$0xff] %v4939_v2  ;;  %v4965_v8 = vpop.f32.mrb[12].mxu0 }
 0x4ed   :  { %v5859_v9 = vpop.eup %5858  ;;  %4360 = vst [vmem:[%s7652_s10 + $0x8] sm:$0xff] %v4940_v6  ;;  %v4966_v10 = vpop.f32.mrb[13].mxu0 }
 0x4ee   :  { %v5861_v12 = vpop.eup %5860  ;;  %v4943_v13 = vpack.c.bf16 %v5859_v9, %v5855_v3  ;;  %v4967_v11 = vadd.f32 %v4966_v10, %v4965_v8  ;;  %v4968_v14 = vpop.f32.mrb[14].mxu0 }
 0x4ef   :  { %v4944_v17 = vpack.c.bf16 %v5861_v12, %v5857_v7  ;;  %v4969_v18 = vpop.f32.mrb[15].mxu0 }
 0x4f0   :  { %4364 = vst [vmem:[%s7652_s10 + $0x1c] sm:$0xff] %v4943_v13  ;;  %v4970_v19 = vadd.f32 %v4969_v18, %v4968_v14  ;;  %v4184_v25 = vadd.f32 %v4967_v11, %v2731_v22 }
 0x4f1   :  { %4365 = vst [vmem:[%s7652_s10 + $0x24] sm:$0xff] %v4944_v17 }
 0x4f2   :  { %v4187_v28 = vadd.f32 %v4970_v19, %v2731_v22 }
 0x50c   :  { %v4987_v23 = vpop.f32.mrb[16].mxu0 }
 0x50d   :  { %v4988_v24 = vpop.f32.mrb[17].mxu0 }
 0x50e   :  { %v4989_v26 = vadd.f32 %v4988_v24, %v4987_v23  ;;  %v4990_v4 = vpop.f32.mrb[18].mxu0 }
 0x50f   :  { %v4991_v27 = vpop.f32.mrb[19].mxu0 }
 0x510   :  { %v4225_v29 = vadd.f32 %v4989_v26, %v4184_v25  ;;  %v4992_v30 = vadd.f32 %v4991_v27, %v4990_v4 }
 0x512   :  { %v4921_v31 = vmul.f32 -1.442695, %v4225_v29  ;;  %v4228_v32 = vadd.f32 %v4992_v30, %v4187_v28 }
 0x514   :  { %5862 = vpow2.f32 %v4921_v31  ;;  %v4928_v33 = vmul.f32 -1.442695, %v4228_v32 }
 0x516   :  { %5864 = vpow2.f32 %v4928_v33 }
 0x51e   :  { %v5863_v51 = vpop.eup %5862 }
 0x51f   :  { %v4279_v34 = vadd.f32 1.0, %v5863_v51 }
 0x520   :  { %v5865_v35 = vpop.eup %5864 }
 0x521   :  { %5866 = vrcp.f32 %v4279_v34  ;;  %v4286_v52 = vadd.f32 1.0, %v5865_v35 }
 0x523   :  { %5868 = vrcp.f32 %v4286_v52 }
 0x52b   :  { %v5867_v36 = vpop.eup %5866 }
 0x52c   :  { %v4942_v37 = vpack.c.bf16 %v5867_v36, %v5867_v36 }
 0x52d   :  { %v5869_v54 = vpop.eup %5868 }
 0x52e   :  { %4363 = vst.msk [vmem:[%s7652_s10 + $0x18] sm:$0xf] %vm4362_vm1, %v4942_v37  ;;  %v4946_v38 = vpack.c.bf16 %v5869_v54, %v5869_v54 }
 0x530   :  { %4367 = vst.msk [vmem:[%s7652_s10 + $0x34] sm:$0xf] %vm4362_vm1, %v4946_v38 }
 0x54b   :  { %v4140_v42 = vpop.f32.mrb[16].mxu1 }
 0x54c   :  { %v5013_v43 = vadd.f32 %v4140_v42, %v2723_v40  ;;  %v4142_v44 = vpop.f32.mrb[17].mxu1 }
 0x54d   :  { %v5014_v45 = vadd.f32 %v4142_v44, %v2727_v41  ;;  %v4144_v46 = vpop.f32.mrb[18].mxu1 }
 0x54e   :  { %v4919_v47 = vmul.f32 -1.442695, %v5013_v43  ;;  %v5015_v48 = vadd.f32 %v4144_v46, %v2723_v40  ;;  %v4146_v16 = vpop.f32.mrb[19].mxu1 }
 0x54f   :  { %v4920_v49 = vmul.f32 -1.442695, %v5014_v45  ;;  %v5016_v53 = vadd.f32 %v4146_v16, %v2727_v41 }
 0x550   :  { %5870 = vpow2.f32 %v4919_v47  ;;  %v4926_v15 = vmul.f32 -1.442695, %v5015_v48 }
 0x551   :  { %5872 = vpow2.f32 %v4920_v49  ;;  %v4927_v5 = vmul.f32 -1.442695, %v5016_v53 }
 0x552   :  { %5874 = vpow2.f32 %v4926_v15 }
 0x553   :  { %5876 = vpow2.f32 %v4927_v5 }
 0x55a   :  { %v5871_v50 = vpop.eup %5870 }
 0x55b   :  { %v5873_v56 = vpop.eup %5872  ;;  %v4277_v57 = vadd.f32 1.0, %v5871_v50 }
 0x55c   :  { %v5875_v20 = vpop.eup %5874  ;;  %v4278_v58 = vadd.f32 1.0, %v5873_v56 }
 0x55d   :  { %v5877_v59 = vpop.eup %5876  ;;  %5878 = vrcp.f32 %v4277_v57  ;;  %v4284_v60 = vadd.f32 1.0, %v5875_v20 }
 0x55e   :  { %5880 = vrcp.f32 %v4278_v58  ;;  %v4285_v61 = vadd.f32 1.0, %v5877_v59 }
 0x55f   :  { %5882 = vrcp.f32 %v4284_v60 }
 0x560   :  { %5884 = vrcp.f32 %v4285_v61 }
 0x567   :  { %v5879_v62 = vpop.eup %5878 }
 0x568   :  { %v5881_v63 = vpop.eup %5880 }
 0x569   :  { %v5883_v0 = vpop.eup %5882  ;;  %v4941_v1 = vpack.c.bf16 %v5881_v63, %v5879_v62 }
 0x56a   :  { %v5885_v2 = vpop.eup %5884 }
 0x56b   :  { %4361 = vst [vmem:[%s7652_s10 + $0x10] sm:$0xff] %v4941_v1  ;;  %v4945_v3 = vpack.c.bf16 %v5885_v2, %v5883_v0 }
 0x56d   :  { %4366 = vst [vmem:[%s7652_s10 + $0x2c] sm:$0xff] %v4945_v3 }

</bundles_post_ra>
